<compile_context>
chip_gen: v7x
topology: tpu7x:2x2x1
jax: 0.10.0
libtpu: 0.0.40
codegen_flags: <defaults>
</compile_context>

<pallas_src>
import jax
import jax.numpy as jnp
from jax import lax
from jax.experimental import pallas as pl
from jax.experimental.pallas import tpu as pltpu


def _round_up(x, m):
    return ((x + m - 1) // m) * m


def _vmem_plan():
    """(scoped-VMEM ceiling, physical VMEM) with generation-aware headroom."""
    phys = 64 * 2 ** 20
    try:
        info = pltpu.get_tpu_info()
        phys = int(getattr(info, "vmem_capacity_bytes", phys)) or phys
    except Exception:
        pass
    if phys <= 64 * 2 ** 20:        # v7x-class: 64 MiB per TensorCore
        return 48 * 2 ** 20, phys
    return 100 * 2 ** 20, phys      # v5e / v6e-class: 128 MiB physical


def _pick_batch_block(N, per_batch_bytes, scratch_bytes, budget):
    """Largest divisor B of N (<= 8) whose double-buffered blocks fit budget."""
    best = 1
    for b in range(1, min(N, 8) + 1):
        if N % b:
            continue
        if 2 * 2 * b * per_batch_bytes + scratch_bytes <= budget:
            best = b
    return best


def _make_kernel(B, C, H, W, kH, kW, h, w, M, Mp):
    """Kernel over one (B, H, W, C) block of preds & targets -> scalar sum."""

    def pool_one(src_ref, b, base, pool_ref):
        # Max-pool plane b of src_ref into rows [base, base + M) of pool_ref.
        # Ragged ceil_mode edge windows simply use fewer elements (identical to
        # PyTorch's implicit -inf padding).
        for m in range(h):
            r0, r1 = m * kH, min((m + 1) * kH, H)
            acc = src_ref[b, r0].astype(jnp.float32)            # (W, C) slab
            for rr in range(r0 + 1, r1):                        # VPU maxima
                acc = jnp.maximum(acc, src_ref[b, rr].astype(jnp.float32))
            for l in range(w):
                c0, c1 = l * kW, min((l + 1) * kW, W)
                val = jnp.max(acc[c0:c1, :], axis=0)            # (C,) XLU
                pool_ref[base + m * w + l, :] = val             # lane-dense row

    contract_last = (((1,), (1,)), ((), ()))

    def kernel(p_ref, t_ref, out_ref, pool_ref):
        # Only the padded rows [M, Mp) / [Mp+M, 2Mp) need zeroing: their norm
        # becomes 1e-8 and their gram rows/cols 0, so they are loss-neutral.
        # Re-zero every grid step (scratch persists across steps; gating this
        # on program_id == 0 would be wrong under megacore "parallel" sharding).
        if Mp > M:
            z = jnp.zeros((Mp - M, C), jnp.float32)
            pool_ref[M:Mp, :] = z
            pool_ref[Mp + M:2 * Mp, :] = z

        step_sum = jnp.float32(0.0)
        for b in range(B):                       # small static unroll
            pool_one(p_ref, b, 0, pool_ref)      # preds   -> rows [0,  M)
            pool_one(t_ref, b, Mp, pool_ref)     # targets -> rows [Mp, Mp+M)

            X = pool_ref[...]                                   # (2Mp, C)
            # Fold the L2 normalization into the gram: one MXU matmul on the
            # stacked operand yields both raw grams, then scale by outer(r, r).
            # The reciprocal touches only 2*Mp values, so the exact form is
            # kept for bit-level parity with PyTorch's divide even when St and
            # Sp nearly cancel (approx=True is a free EUP swap otherwise).
            n2 = jnp.sum(X * X, axis=1, keepdims=True)          # (2Mp, 1)
            r = pl.reciprocal(jnp.sqrt(n2) + 1e-8)              # 1/(||x||+1e-8)
            G = lax.dot_general(X, X, contract_last,
                                preferred_element_type=jnp.float32)   # (2Mp,2Mp)
            rr = lax.dot_general(r, r, contract_last,
                                 preferred_element_type=jnp.float32)  # outer(r,r)
            Gn = G * rr
            d = Gn[Mp:, Mp:] - Gn[:Mp, :Mp]     # St - Sp (padded rows/cols = 0)
            step_sum = step_sum + jnp.sum(d * d)

        out_ref[...] = step_sum.reshape(1, 1)

    return kernel


def criterion_pairwise(preds, targets, scale):
    """Pallas TPU implementation of CriterionPairWise(scale)(preds, targets).

    preds / targets: (N, C, H, W), any float dtype (kept native; the kernel
    upcasts per-slice, matching the module's post-pool .float()).
    """
    N, C, H, W = preds.shape
    kH = max(int(H * scale), 1)
    kW = max(int(W * scale), 1)
    h = -(-H // kH)                 # ceil_mode output sizes (stride == kernel)
    w = -(-W // kW)
    M = h * w
    Mp = _round_up(max(M, 8), 8)    # sublane-aligned offset for the target rows
    # TODO(synk): for very small `scale` (huge M = h*w) roll the pooling loops
    # with lax.fori_loop instead of the static unroll used here.

    # Channels-last so C lands on the lane axis inside the kernel.
    # TODO(synk): accept NHWC producers directly and skip this transpose.
    p = jnp.transpose(preds, (0, 2, 3, 1))
    t = jnp.transpose(targets, (0, 2, 3, 1))

    itemsize = max(preds.dtype.itemsize, targets.dtype.itemsize)
    per_batch_bytes = H * W * C * itemsize
    scratch_bytes = 2 * Mp * max(C, 128) * 4
    ceiling, phys = _vmem_plan()
    B = _pick_batch_block(N, per_batch_bytes, scratch_bytes, int(0.7 * ceiling))
    steps = N // B

    need = 2 * 2 * B * per_batch_bytes + scratch_bytes + (1 << 20)
    vmem_limit = int(min(ceiling, max(32 * 2 ** 20, 2 * need)))
    if need > vmem_limit:
        # Whole-plane blocks barely fit: hand over everything we dare.
        # TODO(synk): add an H-strip grid axis ("arbitrary", running max into
        # the pooled scratch, gram under pl.when on the last strip) for planes
        # too large for whole-plane double buffering (esp. v7x's 64 MiB VMEM).
        vmem_limit = int(min(phys - 8 * 2 ** 20, need + (8 << 20)))

    kernel = _make_kernel(B, C, H, W, kH, kW, h, w, M, Mp)

    per_step = pl.pallas_call(
        kernel,
        out_shape=jax.ShapeDtypeStruct((steps, 1), jnp.float32),
        grid_spec=pltpu.PrefetchScalarGridSpec(
            num_scalar_prefetch=0,
            grid=(steps,),
            in_specs=[pl.BlockSpec((B, H, W, C), lambda g: (g, 0, 0, 0)),
                      pl.BlockSpec((B, H, W, C), lambda g: (g, 0, 0, 0))],
            out_specs=pl.BlockSpec((1, 1), lambda g: (g, 0)),
            scratch_shapes=[pltpu.VMEM((2 * Mp, C), jnp.float32)],
        ),
        compiler_params=pltpu.CompilerParams(
            dimension_semantics=("parallel",),
            vmem_limit_bytes=vmem_limit),
    )(p, t)

    # loss = sum((St - Sp)^2) / (h*w)^2 / N
    return jnp.sum(per_step) / (float(M) ** 2 * N)


def criterion_pairwise_ref(preds, targets, scale):
    """Pure-JAX reference mirroring the PyTorch module exactly."""
    N, C, H, W = preds.shape
    kH = max(int(H * scale), 1)
    kW = max(int(W * scale), 1)
    h = -(-H // kH)
    w = -(-W // kW)

    def maxpool(x):
        pad_h = h * kH - H
        pad_w = w * kW - W
        return lax.reduce_window(
            x, -jnp.inf, lax.max,
            window_dimensions=(1, 1, kH, kW),
            window_strides=(1, 1, kH, kW),
            padding=((0, 0), (0, 0), (0, pad_h), (0, pad_w)))

    def similarity(x):
        x = x.astype(jnp.float32)
        nrm = jnp.sqrt(jnp.sum(x * x, axis=1, keepdims=True)) + 1e-8
        xn = (x / nrm).reshape(N, C, -1)
        return jnp.einsum('icm,icn->imn', xn, xn)

    Pp = maxpool(preds.astype(jnp.float32))
    Tp = maxpool(targets.astype(jnp.float32))
    err = ((similarity(Tp) - similarity(Pp)) ** 2
           / (Tp.shape[-1] * Tp.shape[-2]) ** 2 / Tp.shape[0])
    return jnp.sum(err)


if __name__ == "__main__":
    key = jax.random.PRNGKey(0)
    k1, k2 = jax.random.split(key)
    preds = jax.random.normal(k1, (2, 4, 16, 16), dtype=jnp.float32)
    targets = jax.random.normal(k2, (2, 4, 16, 16), dtype=jnp.float32)
    scale = 0.5

    out = criterion_pairwise(preds, targets, scale)
    jax.block_until_ready(out)

    ref = criterion_pairwise_ref(preds, targets, scale)
    assert jnp.allclose(out, ref, rtol=1e-3, atol=1e-6), (out, ref)
    print("KERNEL_OK")
</pallas_src>

<mosaic_0001>
module attributes {stable_mosaic.version = 11 : i64} {
  func.func @kernel(%arg0: i32, %arg1: memref<2x16x16x4xf32, #tpu.memory_space<vmem>>, %arg2: memref<2x16x16x4xf32, #tpu.memory_space<vmem>>, %arg3: memref<1x1xf32, #tpu.memory_space<vmem>>, %arg4: memref<16x4xf32, #tpu.memory_space<vmem>>) attributes {dimension_semantics = [#tpu.dimension_semantics<parallel>], iteration_bounds = array<i64: 1>, scalar_prefetch = 0 : i64, scratch_operands = 1 : i64, tpu.core_type = #tpu.core_type<tc>, window_params = [{transform_indices = @transform_0, window_bounds = array<i64: 2, 16, 16, 4>}, {transform_indices = @transform_1, window_bounds = array<i64: 2, 16, 16, 4>}, {transform_indices = @transform_2, window_bounds = array<i64: 1, 1>}]} {
    %cst = arith.constant 0.000000e+00 : f32
    %0 = vector.broadcast %cst : f32 to vector<4x4xf32>
    %c4 = arith.constant 4 : index
    %c0 = arith.constant 0 : index
    %1 = vector.load %arg4[%c4, %c0] : memref<16x4xf32, #tpu.memory_space<vmem>>, vector<4x4xf32>
    tpu.vector_store %arg4[%c4, %c0], %0 {strides = array<i32>} : memref<16x4xf32, #tpu.memory_space<vmem>>, vector<4x4xf32>,
    %c12 = arith.constant 12 : index
    %c0_0 = arith.constant 0 : index
    %2 = vector.load %arg4[%c12, %c0_0] : memref<16x4xf32, #tpu.memory_space<vmem>>, vector<4x4xf32>
    tpu.vector_store %arg4[%c12, %c0_0], %0 {strides = array<i32>} : memref<16x4xf32, #tpu.memory_space<vmem>>, vector<4x4xf32>,
    %c0_1 = arith.constant 0 : index
    %c0_2 = arith.constant 0 : index
    %c0_3 = arith.constant 0 : index
    %c0_4 = arith.constant 0 : index
    %3 = vector.load %arg1[%c0_1, %c0_2, %c0_3, %c0_4] : memref<2x16x16x4xf32, #tpu.memory_space<vmem>>, vector<1x1x16x4xf32>
    %4 = vector.shape_cast %3 : vector<1x1x16x4xf32> to vector<16x4xf32>
    %c0_5 = arith.constant 0 : index
    %c1 = arith.constant 1 : index
    %c0_6 = arith.constant 0 : index
    %c0_7 = arith.constant 0 : index
    %5 = vector.load %arg1[%c0_5, %c1, %c0_6, %c0_7] : memref<2x16x16x4xf32, #tpu.memory_space<vmem>>, vector<1x1x16x4xf32>
    %6 = vector.shape_cast %5 : vector<1x1x16x4xf32> to vector<16x4xf32>
    %7 = arith.maximumf %4, %6 : vector<16x4xf32>
    %c0_8 = arith.constant 0 : index
    %c2 = arith.constant 2 : index
    %c0_9 = arith.constant 0 : index
    %c0_10 = arith.constant 0 : index
    %8 = vector.load %arg1[%c0_8, %c2, %c0_9, %c0_10] : memref<2x16x16x4xf32, #tpu.memory_space<vmem>>, vector<1x1x16x4xf32>
    %9 = vector.shape_cast %8 : vector<1x1x16x4xf32> to vector<16x4xf32>
    %10 = arith.maximumf %7, %9 : vector<16x4xf32>
    %c0_11 = arith.constant 0 : index
    %c3 = arith.constant 3 : index
    %c0_12 = arith.constant 0 : index
    %c0_13 = arith.constant 0 : index
    %11 = vector.load %arg1[%c0_11, %c3, %c0_12, %c0_13] : memref<2x16x16x4xf32, #tpu.memory_space<vmem>>, vector<1x1x16x4xf32>
    %12 = vector.shape_cast %11 : vector<1x1x16x4xf32> to vector<16x4xf32>
    %13 = arith.maximumf %10, %12 : vector<16x4xf32>
    %c0_14 = arith.constant 0 : index
    %c4_15 = arith.constant 4 : index
    %c0_16 = arith.constant 0 : index
    %c0_17 = arith.constant 0 : index
    %14 = vector.load %arg1[%c0_14, %c4_15, %c0_16, %c0_17] : memref<2x16x16x4xf32, #tpu.memory_space<vmem>>, vector<1x1x16x4xf32>
    %15 = vector.shape_cast %14 : vector<1x1x16x4xf32> to vector<16x4xf32>
    %16 = arith.maximumf %13, %15 : vector<16x4xf32>
    %c0_18 = arith.constant 0 : index
    %c5 = arith.constant 5 : index
    %c0_19 = arith.constant 0 : index
    %c0_20 = arith.constant 0 : index
    %17 = vector.load %arg1[%c0_18, %c5, %c0_19, %c0_20] : memref<2x16x16x4xf32, #tpu.memory_space<vmem>>, vector<1x1x16x4xf32>
    %18 = vector.shape_cast %17 : vector<1x1x16x4xf32> to vector<16x4xf32>
    %19 = arith.maximumf %16, %18 : vector<16x4xf32>
    %c0_21 = arith.constant 0 : index
    %c6 = arith.constant 6 : index
    %c0_22 = arith.constant 0 : index
    %c0_23 = arith.constant 0 : index
    %20 = vector.load %arg1[%c0_21, %c6, %c0_22, %c0_23] : memref<2x16x16x4xf32, #tpu.memory_space<vmem>>, vector<1x1x16x4xf32>
    %21 = vector.shape_cast %20 : vector<1x1x16x4xf32> to vector<16x4xf32>
    %22 = arith.maximumf %19, %21 : vector<16x4xf32>
    %c0_24 = arith.constant 0 : index
    %c7 = arith.constant 7 : index
    %c0_25 = arith.constant 0 : index
    %c0_26 = arith.constant 0 : index
    %23 = vector.load %arg1[%c0_24, %c7, %c0_25, %c0_26] : memref<2x16x16x4xf32, #tpu.memory_space<vmem>>, vector<1x1x16x4xf32>
    %24 = vector.shape_cast %23 : vector<1x1x16x4xf32> to vector<16x4xf32>
    %25 = arith.maximumf %22, %24 : vector<16x4xf32>
    %26 = vector.extract_strided_slice %25 {offsets = [0, 0], sizes = [8, 4], strides = [1, 1]} : vector<16x4xf32> to vector<8x4xf32>
    %cst_27 = arith.constant dense<0xFF800000> : vector<4xf32>
    %27 = vector.multi_reduction <maximumf>, %26, %cst_27 [0] : vector<8x4xf32> to vector<4xf32>
    %c0_28 = arith.constant 0 : index
    %c0_29 = arith.constant 0 : index
    %28 = vector.load %arg4[%c0_28, %c0_29] : memref<16x4xf32, #tpu.memory_space<vmem>>, vector<1x4xf32>
    %29 = vector.shape_cast %28 : vector<1x4xf32> to vector<4xf32>
    %30 = vector.shape_cast %27 : vector<4xf32> to vector<1x4xf32>
    tpu.vector_store %arg4[%c0_28, %c0_29], %30 {strides = array<i32>} : memref<16x4xf32, #tpu.memory_space<vmem>>, vector<1x4xf32>,
    %31 = vector.extract_strided_slice %25 {offsets = [8, 0], sizes = [8, 4], strides = [1, 1]} : vector<16x4xf32> to vector<8x4xf32>
    %cst_30 = arith.constant dense<0xFF800000> : vector<4xf32>
    %32 = vector.multi_reduction <maximumf>, %31, %cst_30 [0] : vector<8x4xf32> to vector<4xf32>
    %c1_31 = arith.constant 1 : index
    %c0_32 = arith.constant 0 : index
    %33 = vector.load %arg4[%c1_31, %c0_32] : memref<16x4xf32, #tpu.memory_space<vmem>>, vector<1x4xf32>
    %34 = vector.shape_cast %33 : vector<1x4xf32> to vector<4xf32>
    %35 = vector.shape_cast %32 : vector<4xf32> to vector<1x4xf32>
    tpu.vector_store %arg4[%c1_31, %c0_32], %35 {strides = array<i32>} : memref<16x4xf32, #tpu.memory_space<vmem>>, vector<1x4xf32>,
    %c0_33 = arith.constant 0 : index
    %c8 = arith.constant 8 : index
    %c0_34 = arith.constant 0 : index
    %c0_35 = arith.constant 0 : index
    %36 = vector.load %arg1[%c0_33, %c8, %c0_34, %c0_35] : memref<2x16x16x4xf32, #tpu.memory_space<vmem>>, vector<1x1x16x4xf32>
    %37 = vector.shape_cast %36 : vector<1x1x16x4xf32> to vector<16x4xf32>
    %c0_36 = arith.constant 0 : index
    %c9 = arith.constant 9 : index
    %c0_37 = arith.constant 0 : index
    %c0_38 = arith.constant 0 : index
    %38 = vector.load %arg1[%c0_36, %c9, %c0_37, %c0_38] : memref<2x16x16x4xf32, #tpu.memory_space<vmem>>, vector<1x1x16x4xf32>
    %39 = vector.shape_cast %38 : vector<1x1x16x4xf32> to vector<16x4xf32>
    %40 = arith.maximumf %37, %39 : vector<16x4xf32>
    %c0_39 = arith.constant 0 : index
    %c10 = arith.constant 10 : index
    %c0_40 = arith.constant 0 : index
    %c0_41 = arith.constant 0 : index
    %41 = vector.load %arg1[%c0_39, %c10, %c0_40, %c0_41] : memref<2x16x16x4xf32, #tpu.memory_space<vmem>>, vector<1x1x16x4xf32>
    %42 = vector.shape_cast %41 : vector<1x1x16x4xf32> to vector<16x4xf32>
    %43 = arith.maximumf %40, %42 : vector<16x4xf32>
    %c0_42 = arith.constant 0 : index
    %c11 = arith.constant 11 : index
    %c0_43 = arith.constant 0 : index
    %c0_44 = arith.constant 0 : index
    %44 = vector.load %arg1[%c0_42, %c11, %c0_43, %c0_44] : memref<2x16x16x4xf32, #tpu.memory_space<vmem>>, vector<1x1x16x4xf32>
    %45 = vector.shape_cast %44 : vector<1x1x16x4xf32> to vector<16x4xf32>
    %46 = arith.maximumf %43, %45 : vector<16x4xf32>
    %c0_45 = arith.constant 0 : index
    %c12_46 = arith.constant 12 : index
    %c0_47 = arith.constant 0 : index
    %c0_48 = arith.constant 0 : index
    %47 = vector.load %arg1[%c0_45, %c12_46, %c0_47, %c0_48] : memref<2x16x16x4xf32, #tpu.memory_space<vmem>>, vector<1x1x16x4xf32>
    %48 = vector.shape_cast %47 : vector<1x1x16x4xf32> to vector<16x4xf32>
    %49 = arith.maximumf %46, %48 : vector<16x4xf32>
    %c0_49 = arith.constant 0 : index
    %c13 = arith.constant 13 : index
    %c0_50 = arith.constant 0 : index
    %c0_51 = arith.constant 0 : index
    %50 = vector.load %arg1[%c0_49, %c13, %c0_50, %c0_51] : memref<2x16x16x4xf32, #tpu.memory_space<vmem>>, vector<1x1x16x4xf32>
    %51 = vector.shape_cast %50 : vector<1x1x16x4xf32> to vector<16x4xf32>
    %52 = arith.maximumf %49, %51 : vector<16x4xf32>
    %c0_52 = arith.constant 0 : index
    %c14 = arith.constant 14 : index
    %c0_53 = arith.constant 0 : index
    %c0_54 = arith.constant 0 : index
    %53 = vector.load %arg1[%c0_52, %c14, %c0_53, %c0_54] : memref<2x16x16x4xf32, #tpu.memory_space<vmem>>, vector<1x1x16x4xf32>
    %54 = vector.shape_cast %53 : vector<1x1x16x4xf32> to vector<16x4xf32>
    %55 = arith.maximumf %52, %54 : vector<16x4xf32>
    %c0_55 = arith.constant 0 : index
    %c15 = arith.constant 15 : index
    %c0_56 = arith.constant 0 : index
    %c0_57 = arith.constant 0 : index
    %56 = vector.load %arg1[%c0_55, %c15, %c0_56, %c0_57] : memref<2x16x16x4xf32, #tpu.memory_space<vmem>>, vector<1x1x16x4xf32>
    %57 = vector.shape_cast %56 : vector<1x1x16x4xf32> to vector<16x4xf32>
    %58 = arith.maximumf %55, %57 : vector<16x4xf32>
    %59 = vector.extract_strided_slice %58 {offsets = [0, 0], sizes = [8, 4], strides = [1, 1]} : vector<16x4xf32> to vector<8x4xf32>
    %cst_58 = arith.constant dense<0xFF800000> : vector<4xf32>
    %60 = vector.multi_reduction <maximumf>, %59, %cst_58 [0] : vector<8x4xf32> to vector<4xf32>
    %c2_59 = arith.constant 2 : index
    %c0_60 = arith.constant 0 : index
    %61 = vector.load %arg4[%c2_59, %c0_60] : memref<16x4xf32, #tpu.memory_space<vmem>>, vector<1x4xf32>
    %62 = vector.shape_cast %61 : vector<1x4xf32> to vector<4xf32>
    %63 = vector.shape_cast %60 : vector<4xf32> to vector<1x4xf32>
    tpu.vector_store %arg4[%c2_59, %c0_60], %63 {strides = array<i32>} : memref<16x4xf32, #tpu.memory_space<vmem>>, vector<1x4xf32>,
    %64 = vector.extract_strided_slice %58 {offsets = [8, 0], sizes = [8, 4], strides = [1, 1]} : vector<16x4xf32> to vector<8x4xf32>
    %cst_61 = arith.constant dense<0xFF800000> : vector<4xf32>
    %65 = vector.multi_reduction <maximumf>, %64, %cst_61 [0] : vector<8x4xf32> to vector<4xf32>
    %c3_62 = arith.constant 3 : index
    %c0_63 = arith.constant 0 : index
    %66 = vector.load %arg4[%c3_62, %c0_63] : memref<16x4xf32, #tpu.memory_space<vmem>>, vector<1x4xf32>
    %67 = vector.shape_cast %66 : vector<1x4xf32> to vector<4xf32>
    %68 = vector.shape_cast %65 : vector<4xf32> to vector<1x4xf32>
    tpu.vector_store %arg4[%c3_62, %c0_63], %68 {strides = array<i32>} : memref<16x4xf32, #tpu.memory_space<vmem>>, vector<1x4xf32>,
    %c0_64 = arith.constant 0 : index
    %c0_65 = arith.constant 0 : index
    %c0_66 = arith.constant 0 : index
    %c0_67 = arith.constant 0 : index
    %69 = vector.load %arg2[%c0_64, %c0_65, %c0_66, %c0_67] : memref<2x16x16x4xf32, #tpu.memory_space<vmem>>, vector<1x1x16x4xf32>
    %70 = vector.shape_cast %69 : vector<1x1x16x4xf32> to vector<16x4xf32>
    %c0_68 = arith.constant 0 : index
    %c1_69 = arith.constant 1 : index
    %c0_70 = arith.constant 0 : index
    %c0_71 = arith.constant 0 : index
    %71 = vector.load %arg2[%c0_68, %c1_69, %c0_70, %c0_71] : memref<2x16x16x4xf32, #tpu.memory_space<vmem>>, vector<1x1x16x4xf32>
    %72 = vector.shape_cast %71 : vector<1x1x16x4xf32> to vector<16x4xf32>
    %73 = arith.maximumf %70, %72 : vector<16x4xf32>
    %c0_72 = arith.constant 0 : index
    %c2_73 = arith.constant 2 : index
    %c0_74 = arith.constant 0 : index
    %c0_75 = arith.constant 0 : index
    %74 = vector.load %arg2[%c0_72, %c2_73, %c0_74, %c0_75] : memref<2x16x16x4xf32, #tpu.memory_space<vmem>>, vector<1x1x16x4xf32>
    %75 = vector.shape_cast %74 : vector<1x1x16x4xf32> to vector<16x4xf32>
    %76 = arith.maximumf %73, %75 : vector<16x4xf32>
    %c0_76 = arith.constant 0 : index
    %c3_77 = arith.constant 3 : index
    %c0_78 = arith.constant 0 : index
    %c0_79 = arith.constant 0 : index
    %77 = vector.load %arg2[%c0_76, %c3_77, %c0_78, %c0_79] : memref<2x16x16x4xf32, #tpu.memory_space<vmem>>, vector<1x1x16x4xf32>
    %78 = vector.shape_cast %77 : vector<1x1x16x4xf32> to vector<16x4xf32>
    %79 = arith.maximumf %76, %78 : vector<16x4xf32>
    %c0_80 = arith.constant 0 : index
    %c4_81 = arith.constant 4 : index
    %c0_82 = arith.constant 0 : index
    %c0_83 = arith.constant 0 : index
    %80 = vector.load %arg2[%c0_80, %c4_81, %c0_82, %c0_83] : memref<2x16x16x4xf32, #tpu.memory_space<vmem>>, vector<1x1x16x4xf32>
    %81 = vector.shape_cast %80 : vector<1x1x16x4xf32> to vector<16x4xf32>
    %82 = arith.maximumf %79, %81 : vector<16x4xf32>
    %c0_84 = arith.constant 0 : index
    %c5_85 = arith.constant 5 : index
    %c0_86 = arith.constant 0 : index
    %c0_87 = arith.constant 0 : index
    %83 = vector.load %arg2[%c0_84, %c5_85, %c0_86, %c0_87] : memref<2x16x16x4xf32, #tpu.memory_space<vmem>>, vector<1x1x16x4xf32>
    %84 = vector.shape_cast %83 : vector<1x1x16x4xf32> to vector<16x4xf32>
    %85 = arith.maximumf %82, %84 : vector<16x4xf32>
    %c0_88 = arith.constant 0 : index
    %c6_89 = arith.constant 6 : index
    %c0_90 = arith.constant 0 : index
    %c0_91 = arith.constant 0 : index
    %86 = vector.load %arg2[%c0_88, %c6_89, %c0_90, %c0_91] : memref<2x16x16x4xf32, #tpu.memory_space<vmem>>, vector<1x1x16x4xf32>
    %87 = vector.shape_cast %86 : vector<1x1x16x4xf32> to vector<16x4xf32>
    %88 = arith.maximumf %85, %87 : vector<16x4xf32>
    %c0_92 = arith.constant 0 : index
    %c7_93 = arith.constant 7 : index
    %c0_94 = arith.constant 0 : index
    %c0_95 = arith.constant 0 : index
    %89 = vector.load %arg2[%c0_92, %c7_93, %c0_94, %c0_95] : memref<2x16x16x4xf32, #tpu.memory_space<vmem>>, vector<1x1x16x4xf32>
    %90 = vector.shape_cast %89 : vector<1x1x16x4xf32> to vector<16x4xf32>
    %91 = arith.maximumf %88, %90 : vector<16x4xf32>
    %92 = vector.extract_strided_slice %91 {offsets = [0, 0], sizes = [8, 4], strides = [1, 1]} : vector<16x4xf32> to vector<8x4xf32>
    %cst_96 = arith.constant dense<0xFF800000> : vector<4xf32>
    %93 = vector.multi_reduction <maximumf>, %92, %cst_96 [0] : vector<8x4xf32> to vector<4xf32>
    %c8_97 = arith.constant 8 : index
    %c0_98 = arith.constant 0 : index
    %94 = vector.load %arg4[%c8_97, %c0_98] : memref<16x4xf32, #tpu.memory_space<vmem>>, vector<1x4xf32>
    %95 = vector.shape_cast %94 : vector<1x4xf32> to vector<4xf32>
    %96 = vector.shape_cast %93 : vector<4xf32> to vector<1x4xf32>
    tpu.vector_store %arg4[%c8_97, %c0_98], %96 {strides = array<i32>} : memref<16x4xf32, #tpu.memory_space<vmem>>, vector<1x4xf32>,
    %97 = vector.extract_strided_slice %91 {offsets = [8, 0], sizes = [8, 4], strides = [1, 1]} : vector<16x4xf32> to vector<8x4xf32>
    %cst_99 = arith.constant dense<0xFF800000> : vector<4xf32>
    %98 = vector.multi_reduction <maximumf>, %97, %cst_99 [0] : vector<8x4xf32> to vector<4xf32>
    %c9_100 = arith.constant 9 : index
    %c0_101 = arith.constant 0 : index
    %99 = vector.load %arg4[%c9_100, %c0_101] : memref<16x4xf32, #tpu.memory_space<vmem>>, vector<1x4xf32>
    %100 = vector.shape_cast %99 : vector<1x4xf32> to vector<4xf32>
    %101 = vector.shape_cast %98 : vector<4xf32> to vector<1x4xf32>
    tpu.vector_store %arg4[%c9_100, %c0_101], %101 {strides = array<i32>} : memref<16x4xf32, #tpu.memory_space<vmem>>, vector<1x4xf32>,
    %c0_102 = arith.constant 0 : index
    %c8_103 = arith.constant 8 : index
    %c0_104 = arith.constant 0 : index
    %c0_105 = arith.constant 0 : index
    %102 = vector.load %arg2[%c0_102, %c8_103, %c0_104, %c0_105] : memref<2x16x16x4xf32, #tpu.memory_space<vmem>>, vector<1x1x16x4xf32>
    %103 = vector.shape_cast %102 : vector<1x1x16x4xf32> to vector<16x4xf32>
    %c0_106 = arith.constant 0 : index
    %c9_107 = arith.constant 9 : index
    %c0_108 = arith.constant 0 : index
    %c0_109 = arith.constant 0 : index
    %104 = vector.load %arg2[%c0_106, %c9_107, %c0_108, %c0_109] : memref<2x16x16x4xf32, #tpu.memory_space<vmem>>, vector<1x1x16x4xf32>
    %105 = vector.shape_cast %104 : vector<1x1x16x4xf32> to vector<16x4xf32>
    %106 = arith.maximumf %103, %105 : vector<16x4xf32>
    %c0_110 = arith.constant 0 : index
    %c10_111 = arith.constant 10 : index
    %c0_112 = arith.constant 0 : index
    %c0_113 = arith.constant 0 : index
    %107 = vector.load %arg2[%c0_110, %c10_111, %c0_112, %c0_113] : memref<2x16x16x4xf32, #tpu.memory_space<vmem>>, vector<1x1x16x4xf32>
    %108 = vector.shape_cast %107 : vector<1x1x16x4xf32> to vector<16x4xf32>
    %109 = arith.maximumf %106, %108 : vector<16x4xf32>
    %c0_114 = arith.constant 0 : index
    %c11_115 = arith.constant 11 : index
    %c0_116 = arith.constant 0 : index
    %c0_117 = arith.constant 0 : index
    %110 = vector.load %arg2[%c0_114, %c11_115, %c0_116, %c0_117] : memref<2x16x16x4xf32, #tpu.memory_space<vmem>>, vector<1x1x16x4xf32>
    %111 = vector.shape_cast %110 : vector<1x1x16x4xf32> to vector<16x4xf32>
    %112 = arith.maximumf %109, %111 : vector<16x4xf32>
    %c0_118 = arith.constant 0 : index
    %c12_119 = arith.constant 12 : index
    %c0_120 = arith.constant 0 : index
    %c0_121 = arith.constant 0 : index
    %113 = vector.load %arg2[%c0_118, %c12_119, %c0_120, %c0_121] : memref<2x16x16x4xf32, #tpu.memory_space<vmem>>, vector<1x1x16x4xf32>
    %114 = vector.shape_cast %113 : vector<1x1x16x4xf32> to vector<16x4xf32>
    %115 = arith.maximumf %112, %114 : vector<16x4xf32>
    %c0_122 = arith.constant 0 : index
    %c13_123 = arith.constant 13 : index
    %c0_124 = arith.constant 0 : index
    %c0_125 = arith.constant 0 : index
    %116 = vector.load %arg2[%c0_122, %c13_123, %c0_124, %c0_125] : memref<2x16x16x4xf32, #tpu.memory_space<vmem>>, vector<1x1x16x4xf32>
    %117 = vector.shape_cast %116 : vector<1x1x16x4xf32> to vector<16x4xf32>
    %118 = arith.maximumf %115, %117 : vector<16x4xf32>
    %c0_126 = arith.constant 0 : index
    %c14_127 = arith.constant 14 : index
    %c0_128 = arith.constant 0 : index
    %c0_129 = arith.constant 0 : index
    %119 = vector.load %arg2[%c0_126, %c14_127, %c0_128, %c0_129] : memref<2x16x16x4xf32, #tpu.memory_space<vmem>>, vector<1x1x16x4xf32>
    %120 = vector.shape_cast %119 : vector<1x1x16x4xf32> to vector<16x4xf32>
    %121 = arith.maximumf %118, %120 : vector<16x4xf32>
    %c0_130 = arith.constant 0 : index
    %c15_131 = arith.constant 15 : index
    %c0_132 = arith.constant 0 : index
    %c0_133 = arith.constant 0 : index
    %122 = vector.load %arg2[%c0_130, %c15_131, %c0_132, %c0_133] : memref<2x16x16x4xf32, #tpu.memory_space<vmem>>, vector<1x1x16x4xf32>
    %123 = vector.shape_cast %122 : vector<1x1x16x4xf32> to vector<16x4xf32>
    %124 = arith.maximumf %121, %123 : vector<16x4xf32>
    %125 = vector.extract_strided_slice %124 {offsets = [0, 0], sizes = [8, 4], strides = [1, 1]} : vector<16x4xf32> to vector<8x4xf32>
    %cst_134 = arith.constant dense<0xFF800000> : vector<4xf32>
    %126 = vector.multi_reduction <maximumf>, %125, %cst_134 [0] : vector<8x4xf32> to vector<4xf32>
    %c10_135 = arith.constant 10 : index
    %c0_136 = arith.constant 0 : index
    %127 = vector.load %arg4[%c10_135, %c0_136] : memref<16x4xf32, #tpu.memory_space<vmem>>, vector<1x4xf32>
    %128 = vector.shape_cast %127 : vector<1x4xf32> to vector<4xf32>
    %129 = vector.shape_cast %126 : vector<4xf32> to vector<1x4xf32>
    tpu.vector_store %arg4[%c10_135, %c0_136], %129 {strides = array<i32>} : memref<16x4xf32, #tpu.memory_space<vmem>>, vector<1x4xf32>,
    %130 = vector.extract_strided_slice %124 {offsets = [8, 0], sizes = [8, 4], strides = [1, 1]} : vector<16x4xf32> to vector<8x4xf32>
    %cst_137 = arith.constant dense<0xFF800000> : vector<4xf32>
    %131 = vector.multi_reduction <maximumf>, %130, %cst_137 [0] : vector<8x4xf32> to vector<4xf32>
    %c11_138 = arith.constant 11 : index
    %c0_139 = arith.constant 0 : index
    %132 = vector.load %arg4[%c11_138, %c0_139] : memref<16x4xf32, #tpu.memory_space<vmem>>, vector<1x4xf32>
    %133 = vector.shape_cast %132 : vector<1x4xf32> to vector<4xf32>
    %134 = vector.shape_cast %131 : vector<4xf32> to vector<1x4xf32>
    tpu.vector_store %arg4[%c11_138, %c0_139], %134 {strides = array<i32>} : memref<16x4xf32, #tpu.memory_space<vmem>>, vector<1x4xf32>,
    %c0_140 = arith.constant 0 : index
    %c0_141 = arith.constant 0 : index
    %135 = vector.load %arg4[%c0_140, %c0_141] : memref<16x4xf32, #tpu.memory_space<vmem>>, vector<16x4xf32>
    %136 = arith.mulf %135, %135 : vector<16x4xf32>
    %cst_142 = arith.constant dense<0.000000e+00> : vector<16xf32>
    %137 = vector.multi_reduction <add>, %136, %cst_142 [1] : vector<16x4xf32> to vector<16xf32>
    %138 = vector.shape_cast %137 : vector<16xf32> to vector<16x1xf32>
    %139 = math.sqrt %138 : vector<16x1xf32>
    %cst_143 = arith.constant 9.99999993E-9 : f32
    %140 = vector.broadcast %cst_143 : f32 to vector<16x1xf32>
    %141 = arith.addf %139, %140 : vector<16x1xf32>
    %142 = tpu.reciprocal %141 : vector<16x1xf32> -> vector<16x1xf32>
    %cst_144 = arith.constant dense<0.000000e+00> : vector<16x16xf32>
    %143 = tpu.matmul %135, %135, %cst_144 {dimension_numbers = #tpu.dot_dimension_numbers<[1], [1], [0], [0], [0, 0, 1, 0], [], []>} : vector<16x4xf32>, vector<16x4xf32>, vector<16x16xf32> -> vector<16x16xf32>
    %cst_145 = arith.constant dense<0.000000e+00> : vector<16x16xf32>
    %144 = tpu.matmul %142, %142, %cst_145 {dimension_numbers = #tpu.dot_dimension_numbers<[1], [1], [0], [0], [0, 0, 1, 0], [], []>} : vector<16x1xf32>, vector<16x1xf32>, vector<16x16xf32> -> vector<16x16xf32>
    %145 = arith.mulf %143, %144 : vector<16x16xf32>
    %146 = vector.extract_strided_slice %145 {offsets = [8, 8], sizes = [8, 8], strides = [1, 1]} : vector<16x16xf32> to vector<8x8xf32>
    %147 = vector.extract_strided_slice %145 {offsets = [0, 0], sizes = [8, 8], strides = [1, 1]} : vector<16x16xf32> to vector<8x8xf32>
    %148 = arith.subf %146, %147 : vector<8x8xf32>
    %149 = arith.mulf %148, %148 : vector<8x8xf32>
    %150 = vector.shape_cast %149 : vector<8x8xf32> to vector<1x8x8xf32>
    %cst_146 = arith.constant dense<0.000000e+00> : vector<1xf32>
    %151 = vector.multi_reduction <add>, %150, %cst_146 [1, 2] : vector<1x8x8xf32> to vector<1xf32>
    %152 = vector.shape_cast %151 : vector<1xf32> to vector<1x1x1xf32>
    %153 = vector.extract %152[0, 0, 0] : f32 from vector<1x1x1xf32>
    %cst_147 = arith.constant 0.000000e+00 : f32
    %154 = arith.addf %cst_147, %153 : f32
    %c1_148 = arith.constant 1 : index
    %c0_149 = arith.constant 0 : index
    %c0_150 = arith.constant 0 : index
    %c0_151 = arith.constant 0 : index
    %155 = vector.load %arg1[%c1_148, %c0_149, %c0_150, %c0_151] : memref<2x16x16x4xf32, #tpu.memory_space<vmem>>, vector<1x1x16x4xf32>
    %156 = vector.shape_cast %155 : vector<1x1x16x4xf32> to vector<16x4xf32>
    %c1_152 = arith.constant 1 : index
    %c1_153 = arith.constant 1 : index
    %c0_154 = arith.constant 0 : index
    %c0_155 = arith.constant 0 : index
    %157 = vector.load %arg1[%c1_152, %c1_153, %c0_154, %c0_155] : memref<2x16x16x4xf32, #tpu.memory_space<vmem>>, vector<1x1x16x4xf32>
    %158 = vector.shape_cast %157 : vector<1x1x16x4xf32> to vector<16x4xf32>
    %159 = arith.maximumf %156, %158 : vector<16x4xf32>
    %c1_156 = arith.constant 1 : index
    %c2_157 = arith.constant 2 : index
    %c0_158 = arith.constant 0 : index
    %c0_159 = arith.constant 0 : index
    %160 = vector.load %arg1[%c1_156, %c2_157, %c0_158, %c0_159] : memref<2x16x16x4xf32, #tpu.memory_space<vmem>>, vector<1x1x16x4xf32>
    %161 = vector.shape_cast %160 : vector<1x1x16x4xf32> to vector<16x4xf32>
    %162 = arith.maximumf %159, %161 : vector<16x4xf32>
    %c1_160 = arith.constant 1 : index
    %c3_161 = arith.constant 3 : index
    %c0_162 = arith.constant 0 : index
    %c0_163 = arith.constant 0 : index
    %163 = vector.load %arg1[%c1_160, %c3_161, %c0_162, %c0_163] : memref<2x16x16x4xf32, #tpu.memory_space<vmem>>, vector<1x1x16x4xf32>
    %164 = vector.shape_cast %163 : vector<1x1x16x4xf32> to vector<16x4xf32>
    %165 = arith.maximumf %162, %164 : vector<16x4xf32>
    %c1_164 = arith.constant 1 : index
    %c4_165 = arith.constant 4 : index
    %c0_166 = arith.constant 0 : index
    %c0_167 = arith.constant 0 : index
    %166 = vector.load %arg1[%c1_164, %c4_165, %c0_166, %c0_167] : memref<2x16x16x4xf32, #tpu.memory_space<vmem>>, vector<1x1x16x4xf32>
    %167 = vector.shape_cast %166 : vector<1x1x16x4xf32> to vector<16x4xf32>
    %168 = arith.maximumf %165, %167 : vector<16x4xf32>
    %c1_168 = arith.constant 1 : index
    %c5_169 = arith.constant 5 : index
    %c0_170 = arith.constant 0 : index
    %c0_171 = arith.constant 0 : index
    %169 = vector.load %arg1[%c1_168, %c5_169, %c0_170, %c0_171] : memref<2x16x16x4xf32, #tpu.memory_space<vmem>>, vector<1x1x16x4xf32>
    %170 = vector.shape_cast %169 : vector<1x1x16x4xf32> to vector<16x4xf32>
    %171 = arith.maximumf %168, %170 : vector<16x4xf32>
    %c1_172 = arith.constant 1 : index
    %c6_173 = arith.constant 6 : index
    %c0_174 = arith.constant 0 : index
    %c0_175 = arith.constant 0 : index
    %172 = vector.load %arg1[%c1_172, %c6_173, %c0_174, %c0_175] : memref<2x16x16x4xf32, #tpu.memory_space<vmem>>, vector<1x1x16x4xf32>
    %173 = vector.shape_cast %172 : vector<1x1x16x4xf32> to vector<16x4xf32>
    %174 = arith.maximumf %171, %173 : vector<16x4xf32>
    %c1_176 = arith.constant 1 : index
    %c7_177 = arith.constant 7 : index
    %c0_178 = arith.constant 0 : index
    %c0_179 = arith.constant 0 : index
    %175 = vector.load %arg1[%c1_176, %c7_177, %c0_178, %c0_179] : memref<2x16x16x4xf32, #tpu.memory_space<vmem>>, vector<1x1x16x4xf32>
    %176 = vector.shape_cast %175 : vector<1x1x16x4xf32> to vector<16x4xf32>
    %177 = arith.maximumf %174, %176 : vector<16x4xf32>
    %178 = vector.extract_strided_slice %177 {offsets = [0, 0], sizes = [8, 4], strides = [1, 1]} : vector<16x4xf32> to vector<8x4xf32>
    %cst_180 = arith.constant dense<0xFF800000> : vector<4xf32>
    %179 = vector.multi_reduction <maximumf>, %178, %cst_180 [0] : vector<8x4xf32> to vector<4xf32>
    %c0_181 = arith.constant 0 : index
    %c0_182 = arith.constant 0 : index
    %180 = vector.load %arg4[%c0_181, %c0_182] : memref<16x4xf32, #tpu.memory_space<vmem>>, vector<1x4xf32>
    %181 = vector.shape_cast %180 : vector<1x4xf32> to vector<4xf32>
    %182 = vector.shape_cast %179 : vector<4xf32> to vector<1x4xf32>
    tpu.vector_store %arg4[%c0_181, %c0_182], %182 {strides = array<i32>} : memref<16x4xf32, #tpu.memory_space<vmem>>, vector<1x4xf32>,
    %183 = vector.extract_strided_slice %177 {offsets = [8, 0], sizes = [8, 4], strides = [1, 1]} : vector<16x4xf32> to vector<8x4xf32>
    %cst_183 = arith.constant dense<0xFF800000> : vector<4xf32>
    %184 = vector.multi_reduction <maximumf>, %183, %cst_183 [0] : vector<8x4xf32> to vector<4xf32>
    %c1_184 = arith.constant 1 : index
    %c0_185 = arith.constant 0 : index
    %185 = vector.load %arg4[%c1_184, %c0_185] : memref<16x4xf32, #tpu.memory_space<vmem>>, vector<1x4xf32>
    %186 = vector.shape_cast %185 : vector<1x4xf32> to vector<4xf32>
    %187 = vector.shape_cast %184 : vector<4xf32> to vector<1x4xf32>
    tpu.vector_store %arg4[%c1_184, %c0_185], %187 {strides = array<i32>} : memref<16x4xf32, #tpu.memory_space<vmem>>, vector<1x4xf32>,
    %c1_186 = arith.constant 1 : index
    %c8_187 = arith.constant 8 : index
    %c0_188 = arith.constant 0 : index
    %c0_189 = arith.constant 0 : index
    %188 = vector.load %arg1[%c1_186, %c8_187, %c0_188, %c0_189] : memref<2x16x16x4xf32, #tpu.memory_space<vmem>>, vector<1x1x16x4xf32>
    %189 = vector.shape_cast %188 : vector<1x1x16x4xf32> to vector<16x4xf32>
    %c1_190 = arith.constant 1 : index
    %c9_191 = arith.constant 9 : index
    %c0_192 = arith.constant 0 : index
    %c0_193 = arith.constant 0 : index
    %190 = vector.load %arg1[%c1_190, %c9_191, %c0_192, %c0_193] : memref<2x16x16x4xf32, #tpu.memory_space<vmem>>, vector<1x1x16x4xf32>
    %191 = vector.shape_cast %190 : vector<1x1x16x4xf32> to vector<16x4xf32>
    %192 = arith.maximumf %189, %191 : vector<16x4xf32>
    %c1_194 = arith.constant 1 : index
    %c10_195 = arith.constant 10 : index
    %c0_196 = arith.constant 0 : index
    %c0_197 = arith.constant 0 : index
    %193 = vector.load %arg1[%c1_194, %c10_195, %c0_196, %c0_197] : memref<2x16x16x4xf32, #tpu.memory_space<vmem>>, vector<1x1x16x4xf32>
    %194 = vector.shape_cast %193 : vector<1x1x16x4xf32> to vector<16x4xf32>
    %195 = arith.maximumf %192, %194 : vector<16x4xf32>
    %c1_198 = arith.constant 1 : index
    %c11_199 = arith.constant 11 : index
    %c0_200 = arith.constant 0 : index
    %c0_201 = arith.constant 0 : index
    %196 = vector.load %arg1[%c1_198, %c11_199, %c0_200, %c0_201] : memref<2x16x16x4xf32, #tpu.memory_space<vmem>>, vector<1x1x16x4xf32>
    %197 = vector.shape_cast %196 : vector<1x1x16x4xf32> to vector<16x4xf32>
    %198 = arith.maximumf %195, %197 : vector<16x4xf32>
    %c1_202 = arith.constant 1 : index
    %c12_203 = arith.constant 12 : index
    %c0_204 = arith.constant 0 : index
    %c0_205 = arith.constant 0 : index
    %199 = vector.load %arg1[%c1_202, %c12_203, %c0_204, %c0_205] : memref<2x16x16x4xf32, #tpu.memory_space<vmem>>, vector<1x1x16x4xf32>
    %200 = vector.shape_cast %199 : vector<1x1x16x4xf32> to vector<16x4xf32>
    %201 = arith.maximumf %198, %200 : vector<16x4xf32>
    %c1_206 = arith.constant 1 : index
    %c13_207 = arith.constant 13 : index
    %c0_208 = arith.constant 0 : index
    %c0_209 = arith.constant 0 : index
    %202 = vector.load %arg1[%c1_206, %c13_207, %c0_208, %c0_209] : memref<2x16x16x4xf32, #tpu.memory_space<vmem>>, vector<1x1x16x4xf32>
    %203 = vector.shape_cast %202 : vector<1x1x16x4xf32> to vector<16x4xf32>
    %204 = arith.maximumf %201, %203 : vector<16x4xf32>
    %c1_210 = arith.constant 1 : index
    %c14_211 = arith.constant 14 : index
    %c0_212 = arith.constant 0 : index
    %c0_213 = arith.constant 0 : index
    %205 = vector.load %arg1[%c1_210, %c14_211, %c0_212, %c0_213] : memref<2x16x16x4xf32, #tpu.memory_space<vmem>>, vector<1x1x16x4xf32>
    %206 = vector.shape_cast %205 : vector<1x1x16x4xf32> to vector<16x4xf32>
    %207 = arith.maximumf %204, %206 : vector<16x4xf32>
    %c1_214 = arith.constant 1 : index
    %c15_215 = arith.constant 15 : index
    %c0_216 = arith.constant 0 : index
    %c0_217 = arith.constant 0 : index
    %208 = vector.load %arg1[%c1_214, %c15_215, %c0_216, %c0_217] : memref<2x16x16x4xf32, #tpu.memory_space<vmem>>, vector<1x1x16x4xf32>
    %209 = vector.shape_cast %208 : vector<1x1x16x4xf32> to vector<16x4xf32>
    %210 = arith.maximumf %207, %209 : vector<16x4xf32>
    %211 = vector.extract_strided_slice %210 {offsets = [0, 0], sizes = [8, 4], strides = [1, 1]} : vector<16x4xf32> to vector<8x4xf32>
    %cst_218 = arith.constant dense<0xFF800000> : vector<4xf32>
    %212 = vector.multi_reduction <maximumf>, %211, %cst_218 [0] : vector<8x4xf32> to vector<4xf32>
    %c2_219 = arith.constant 2 : index
    %c0_220 = arith.constant 0 : index
    %213 = vector.load %arg4[%c2_219, %c0_220] : memref<16x4xf32, #tpu.memory_space<vmem>>, vector<1x4xf32>
    %214 = vector.shape_cast %213 : vector<1x4xf32> to vector<4xf32>
    %215 = vector.shape_cast %212 : vector<4xf32> to vector<1x4xf32>
    tpu.vector_store %arg4[%c2_219, %c0_220], %215 {strides = array<i32>} : memref<16x4xf32, #tpu.memory_space<vmem>>, vector<1x4xf32>,
    %216 = vector.extract_strided_slice %210 {offsets = [8, 0], sizes = [8, 4], strides = [1, 1]} : vector<16x4xf32> to vector<8x4xf32>
    %cst_221 = arith.constant dense<0xFF800000> : vector<4xf32>
    %217 = vector.multi_reduction <maximumf>, %216, %cst_221 [0] : vector<8x4xf32> to vector<4xf32>
    %c3_222 = arith.constant 3 : index
    %c0_223 = arith.constant 0 : index
    %218 = vector.load %arg4[%c3_222, %c0_223] : memref<16x4xf32, #tpu.memory_space<vmem>>, vector<1x4xf32>
    %219 = vector.shape_cast %218 : vector<1x4xf32> to vector<4xf32>
    %220 = vector.shape_cast %217 : vector<4xf32> to vector<1x4xf32>
    tpu.vector_store %arg4[%c3_222, %c0_223], %220 {strides = array<i32>} : memref<16x4xf32, #tpu.memory_space<vmem>>, vector<1x4xf32>,
    %c1_224 = arith.constant 1 : index
    %c0_225 = arith.constant 0 : index
    %c0_226 = arith.constant 0 : index
    %c0_227 = arith.constant 0 : index
    %221 = vector.load %arg2[%c1_224, %c0_225, %c0_226, %c0_227] : memref<2x16x16x4xf32, #tpu.memory_space<vmem>>, vector<1x1x16x4xf32>
    %222 = vector.shape_cast %221 : vector<1x1x16x4xf32> to vector<16x4xf32>
    %c1_228 = arith.constant 1 : index
    %c1_229 = arith.constant 1 : index
    %c0_230 = arith.constant 0 : index
    %c0_231 = arith.constant 0 : index
    %223 = vector.load %arg2[%c1_228, %c1_229, %c0_230, %c0_231] : memref<2x16x16x4xf32, #tpu.memory_space<vmem>>, vector<1x1x16x4xf32>
    %224 = vector.shape_cast %223 : vector<1x1x16x4xf32> to vector<16x4xf32>
    %225 = arith.maximumf %222, %224 : vector<16x4xf32>
    %c1_232 = arith.constant 1 : index
    %c2_233 = arith.constant 2 : index
    %c0_234 = arith.constant 0 : index
    %c0_235 = arith.constant 0 : index
    %226 = vector.load %arg2[%c1_232, %c2_233, %c0_234, %c0_235] : memref<2x16x16x4xf32, #tpu.memory_space<vmem>>, vector<1x1x16x4xf32>
    %227 = vector.shape_cast %226 : vector<1x1x16x4xf32> to vector<16x4xf32>
    %228 = arith.maximumf %225, %227 : vector<16x4xf32>
    %c1_236 = arith.constant 1 : index
    %c3_237 = arith.constant 3 : index
    %c0_238 = arith.constant 0 : index
    %c0_239 = arith.constant 0 : index
    %229 = vector.load %arg2[%c1_236, %c3_237, %c0_238, %c0_239] : memref<2x16x16x4xf32, #tpu.memory_space<vmem>>, vector<1x1x16x4xf32>
    %230 = vector.shape_cast %229 : vector<1x1x16x4xf32> to vector<16x4xf32>
    %231 = arith.maximumf %228, %230 : vector<16x4xf32>
    %c1_240 = arith.constant 1 : index
    %c4_241 = arith.constant 4 : index
    %c0_242 = arith.constant 0 : index
    %c0_243 = arith.constant 0 : index
    %232 = vector.load %arg2[%c1_240, %c4_241, %c0_242, %c0_243] : memref<2x16x16x4xf32, #tpu.memory_space<vmem>>, vector<1x1x16x4xf32>
    %233 = vector.shape_cast %232 : vector<1x1x16x4xf32> to vector<16x4xf32>
    %234 = arith.maximumf %231, %233 : vector<16x4xf32>
    %c1_244 = arith.constant 1 : index
    %c5_245 = arith.constant 5 : index
    %c0_246 = arith.constant 0 : index
    %c0_247 = arith.constant 0 : index
    %235 = vector.load %arg2[%c1_244, %c5_245, %c0_246, %c0_247] : memref<2x16x16x4xf32, #tpu.memory_space<vmem>>, vector<1x1x16x4xf32>
    %236 = vector.shape_cast %235 : vector<1x1x16x4xf32> to vector<16x4xf32>
    %237 = arith.maximumf %234, %236 : vector<16x4xf32>
    %c1_248 = arith.constant 1 : index
    %c6_249 = arith.constant 6 : index
    %c0_250 = arith.constant 0 : index
    %c0_251 = arith.constant 0 : index
    %238 = vector.load %arg2[%c1_248, %c6_249, %c0_250, %c0_251] : memref<2x16x16x4xf32, #tpu.memory_space<vmem>>, vector<1x1x16x4xf32>
    %239 = vector.shape_cast %238 : vector<1x1x16x4xf32> to vector<16x4xf32>
    %240 = arith.maximumf %237, %239 : vector<16x4xf32>
    %c1_252 = arith.constant 1 : index
    %c7_253 = arith.constant 7 : index
    %c0_254 = arith.constant 0 : index
    %c0_255 = arith.constant 0 : index
    %241 = vector.load %arg2[%c1_252, %c7_253, %c0_254, %c0_255] : memref<2x16x16x4xf32, #tpu.memory_space<vmem>>, vector<1x1x16x4xf32>
    %242 = vector.shape_cast %241 : vector<1x1x16x4xf32> to vector<16x4xf32>
    %243 = arith.maximumf %240, %242 : vector<16x4xf32>
    %244 = vector.extract_strided_slice %243 {offsets = [0, 0], sizes = [8, 4], strides = [1, 1]} : vector<16x4xf32> to vector<8x4xf32>
    %cst_256 = arith.constant dense<0xFF800000> : vector<4xf32>
    %245 = vector.multi_reduction <maximumf>, %244, %cst_256 [0] : vector<8x4xf32> to vector<4xf32>
    %c8_257 = arith.constant 8 : index
    %c0_258 = arith.constant 0 : index
    %246 = vector.load %arg4[%c8_257, %c0_258] : memref<16x4xf32, #tpu.memory_space<vmem>>, vector<1x4xf32>
    %247 = vector.shape_cast %246 : vector<1x4xf32> to vector<4xf32>
    %248 = vector.shape_cast %245 : vector<4xf32> to vector<1x4xf32>
    tpu.vector_store %arg4[%c8_257, %c0_258], %248 {strides = array<i32>} : memref<16x4xf32, #tpu.memory_space<vmem>>, vector<1x4xf32>,
    %249 = vector.extract_strided_slice %243 {offsets = [8, 0], sizes = [8, 4], strides = [1, 1]} : vector<16x4xf32> to vector<8x4xf32>
    %cst_259 = arith.constant dense<0xFF800000> : vector<4xf32>
    %250 = vector.multi_reduction <maximumf>, %249, %cst_259 [0] : vector<8x4xf32> to vector<4xf32>
    %c9_260 = arith.constant 9 : index
    %c0_261 = arith.constant 0 : index
    %251 = vector.load %arg4[%c9_260, %c0_261] : memref<16x4xf32, #tpu.memory_space<vmem>>, vector<1x4xf32>
    %252 = vector.shape_cast %251 : vector<1x4xf32> to vector<4xf32>
    %253 = vector.shape_cast %250 : vector<4xf32> to vector<1x4xf32>
    tpu.vector_store %arg4[%c9_260, %c0_261], %253 {strides = array<i32>} : memref<16x4xf32, #tpu.memory_space<vmem>>, vector<1x4xf32>,
    %c1_262 = arith.constant 1 : index
    %c8_263 = arith.constant 8 : index
    %c0_264 = arith.constant 0 : index
    %c0_265 = arith.constant 0 : index
    %254 = vector.load %arg2[%c1_262, %c8_263, %c0_264, %c0_265] : memref<2x16x16x4xf32, #tpu.memory_space<vmem>>, vector<1x1x16x4xf32>
    %255 = vector.shape_cast %254 : vector<1x1x16x4xf32> to vector<16x4xf32>
    %c1_266 = arith.constant 1 : index
    %c9_267 = arith.constant 9 : index
    %c0_268 = arith.constant 0 : index
    %c0_269 = arith.constant 0 : index
    %256 = vector.load %arg2[%c1_266, %c9_267, %c0_268, %c0_269] : memref<2x16x16x4xf32, #tpu.memory_space<vmem>>, vector<1x1x16x4xf32>
    %257 = vector.shape_cast %256 : vector<1x1x16x4xf32> to vector<16x4xf32>
    %258 = arith.maximumf %255, %257 : vector<16x4xf32>
    %c1_270 = arith.constant 1 : index
    %c10_271 = arith.constant 10 : index
    %c0_272 = arith.constant 0 : index
    %c0_273 = arith.constant 0 : index
    %259 = vector.load %arg2[%c1_270, %c10_271, %c0_272, %c0_273] : memref<2x16x16x4xf32, #tpu.memory_space<vmem>>, vector<1x1x16x4xf32>
    %260 = vector.shape_cast %259 : vector<1x1x16x4xf32> to vector<16x4xf32>
    %261 = arith.maximumf %258, %260 : vector<16x4xf32>
    %c1_274 = arith.constant 1 : index
    %c11_275 = arith.constant 11 : index
    %c0_276 = arith.constant 0 : index
    %c0_277 = arith.constant 0 : index
    %262 = vector.load %arg2[%c1_274, %c11_275, %c0_276, %c0_277] : memref<2x16x16x4xf32, #tpu.memory_space<vmem>>, vector<1x1x16x4xf32>
    %263 = vector.shape_cast %262 : vector<1x1x16x4xf32> to vector<16x4xf32>
    %264 = arith.maximumf %261, %263 : vector<16x4xf32>
    %c1_278 = arith.constant 1 : index
    %c12_279 = arith.constant 12 : index
    %c0_280 = arith.constant 0 : index
    %c0_281 = arith.constant 0 : index
    %265 = vector.load %arg2[%c1_278, %c12_279, %c0_280, %c0_281] : memref<2x16x16x4xf32, #tpu.memory_space<vmem>>, vector<1x1x16x4xf32>
    %266 = vector.shape_cast %265 : vector<1x1x16x4xf32> to vector<16x4xf32>
    %267 = arith.maximumf %264, %266 : vector<16x4xf32>
    %c1_282 = arith.constant 1 : index
    %c13_283 = arith.constant 13 : index
    %c0_284 = arith.constant 0 : index
    %c0_285 = arith.constant 0 : index
    %268 = vector.load %arg2[%c1_282, %c13_283, %c0_284, %c0_285] : memref<2x16x16x4xf32, #tpu.memory_space<vmem>>, vector<1x1x16x4xf32>
    %269 = vector.shape_cast %268 : vector<1x1x16x4xf32> to vector<16x4xf32>
    %270 = arith.maximumf %267, %269 : vector<16x4xf32>
    %c1_286 = arith.constant 1 : index
    %c14_287 = arith.constant 14 : index
    %c0_288 = arith.constant 0 : index
    %c0_289 = arith.constant 0 : index
    %271 = vector.load %arg2[%c1_286, %c14_287, %c0_288, %c0_289] : memref<2x16x16x4xf32, #tpu.memory_space<vmem>>, vector<1x1x16x4xf32>
    %272 = vector.shape_cast %271 : vector<1x1x16x4xf32> to vector<16x4xf32>
    %273 = arith.maximumf %270, %272 : vector<16x4xf32>
    %c1_290 = arith.constant 1 : index
    %c15_291 = arith.constant 15 : index
    %c0_292 = arith.constant 0 : index
    %c0_293 = arith.constant 0 : index
    %274 = vector.load %arg2[%c1_290, %c15_291, %c0_292, %c0_293] : memref<2x16x16x4xf32, #tpu.memory_space<vmem>>, vector<1x1x16x4xf32>
    %275 = vector.shape_cast %274 : vector<1x1x16x4xf32> to vector<16x4xf32>
    %276 = arith.maximumf %273, %275 : vector<16x4xf32>
    %277 = vector.extract_strided_slice %276 {offsets = [0, 0], sizes = [8, 4], strides = [1, 1]} : vector<16x4xf32> to vector<8x4xf32>
    %cst_294 = arith.constant dense<0xFF800000> : vector<4xf32>
    %278 = vector.multi_reduction <maximumf>, %277, %cst_294 [0] : vector<8x4xf32> to vector<4xf32>
    %c10_295 = arith.constant 10 : index
    %c0_296 = arith.constant 0 : index
    %279 = vector.load %arg4[%c10_295, %c0_296] : memref<16x4xf32, #tpu.memory_space<vmem>>, vector<1x4xf32>
    %280 = vector.shape_cast %279 : vector<1x4xf32> to vector<4xf32>
    %281 = vector.shape_cast %278 : vector<4xf32> to vector<1x4xf32>
    tpu.vector_store %arg4[%c10_295, %c0_296], %281 {strides = array<i32>} : memref<16x4xf32, #tpu.memory_space<vmem>>, vector<1x4xf32>,
    %282 = vector.extract_strided_slice %276 {offsets = [8, 0], sizes = [8, 4], strides = [1, 1]} : vector<16x4xf32> to vector<8x4xf32>
    %cst_297 = arith.constant dense<0xFF800000> : vector<4xf32>
    %283 = vector.multi_reduction <maximumf>, %282, %cst_297 [0] : vector<8x4xf32> to vector<4xf32>
    %c11_298 = arith.constant 11 : index
    %c0_299 = arith.constant 0 : index
    %284 = vector.load %arg4[%c11_298, %c0_299] : memref<16x4xf32, #tpu.memory_space<vmem>>, vector<1x4xf32>
    %285 = vector.shape_cast %284 : vector<1x4xf32> to vector<4xf32>
    %286 = vector.shape_cast %283 : vector<4xf32> to vector<1x4xf32>
    tpu.vector_store %arg4[%c11_298, %c0_299], %286 {strides = array<i32>} : memref<16x4xf32, #tpu.memory_space<vmem>>, vector<1x4xf32>,
    %c0_300 = arith.constant 0 : index
    %c0_301 = arith.constant 0 : index
    %287 = vector.load %arg4[%c0_300, %c0_301] : memref<16x4xf32, #tpu.memory_space<vmem>>, vector<16x4xf32>
    %288 = arith.mulf %287, %287 : vector<16x4xf32>
    %cst_302 = arith.constant dense<0.000000e+00> : vector<16xf32>
    %289 = vector.multi_reduction <add>, %288, %cst_302 [1] : vector<16x4xf32> to vector<16xf32>
    %290 = vector.shape_cast %289 : vector<16xf32> to vector<16x1xf32>
    %291 = math.sqrt %290 : vector<16x1xf32>
    %cst_303 = arith.constant 9.99999993E-9 : f32
    %292 = vector.broadcast %cst_303 : f32 to vector<16x1xf32>
    %293 = arith.addf %291, %292 : vector<16x1xf32>
    %294 = tpu.reciprocal %293 : vector<16x1xf32> -> vector<16x1xf32>
    %cst_304 = arith.constant dense<0.000000e+00> : vector<16x16xf32>
    %295 = tpu.matmul %287, %287, %cst_304 {dimension_numbers = #tpu.dot_dimension_numbers<[1], [1], [0], [0], [0, 0, 1, 0], [], []>} : vector<16x4xf32>, vector<16x4xf32>, vector<16x16xf32> -> vector<16x16xf32>
    %cst_305 = arith.constant dense<0.000000e+00> : vector<16x16xf32>
    %296 = tpu.matmul %294, %294, %cst_305 {dimension_numbers = #tpu.dot_dimension_numbers<[1], [1], [0], [0], [0, 0, 1, 0], [], []>} : vector<16x1xf32>, vector<16x1xf32>, vector<16x16xf32> -> vector<16x16xf32>
    %297 = arith.mulf %295, %296 : vector<16x16xf32>
    %298 = vector.extract_strided_slice %297 {offsets = [8, 8], sizes = [8, 8], strides = [1, 1]} : vector<16x16xf32> to vector<8x8xf32>
    %299 = vector.extract_strided_slice %297 {offsets = [0, 0], sizes = [8, 8], strides = [1, 1]} : vector<16x16xf32> to vector<8x8xf32>
    %300 = arith.subf %298, %299 : vector<8x8xf32>
    %301 = arith.mulf %300, %300 : vector<8x8xf32>
    %302 = vector.shape_cast %301 : vector<8x8xf32> to vector<1x8x8xf32>
    %cst_306 = arith.constant dense<0.000000e+00> : vector<1xf32>
    %303 = vector.multi_reduction <add>, %302, %cst_306 [1, 2] : vector<1x8x8xf32> to vector<1xf32>
    %304 = vector.shape_cast %303 : vector<1xf32> to vector<1x1x1xf32>
    %305 = vector.extract %304[0, 0, 0] : f32 from vector<1x1x1xf32>
    %306 = arith.addf %154, %305 : f32
    %307 = vector.broadcast %306 : f32 to vector<1x1xf32>
    %c0_307 = arith.constant 0 : index
    %c0_308 = arith.constant 0 : index
    %308 = vector.load %arg3[%c0_307, %c0_308] : memref<1x1xf32, #tpu.memory_space<vmem>>, vector<1x1xf32>
    tpu.vector_store %arg3[%c0_307, %c0_308], %307 {strides = array<i32>} : memref<1x1xf32, #tpu.memory_space<vmem>>, vector<1x1xf32>,
    return
  }
  func.func @transform_0(%arg0: i32) -> (i32, i32, i32, i32) {
    %c0_i32 = arith.constant 0 : i32
    %c0_i32_0 = arith.constant 0 : i32
    %c0_i32_1 = arith.constant 0 : i32
    %c0_i32_2 = arith.constant 0 : i32
    return %arg0, %c0_i32, %c0_i32_0, %c0_i32_1 : i32, i32, i32, i32
  }
  func.func @transform_1(%arg0: i32) -> (i32, i32, i32, i32) {
    %c0_i32 = arith.constant 0 : i32
    %c0_i32_0 = arith.constant 0 : i32
    %c0_i32_1 = arith.constant 0 : i32
    %c0_i32_2 = arith.constant 0 : i32
    return %arg0, %c0_i32, %c0_i32_0, %c0_i32_1 : i32, i32, i32, i32
  }
  func.func @transform_2(%arg0: i32) -> (i32, i32) {
    %c0_i32 = arith.constant 0 : i32
    %c0_i32_0 = arith.constant 0 : i32
    return %arg0, %c0_i32 : i32, i32
  }
}

</mosaic_0001>

<bundles_post_ra>
// kernel: tpu_custom_call.1
= control target key start
LH: loop header
LB: loop body
LE: loop exit
PB: predicated region body
PF: predicated region fallthrough
CT: control target
= control target key end

     0   :  { %vm12_vm0 = vcmask 27648   ;;  %v1148_v3 = vmov 0.0   ;;  %vm52_vm1 = vcmask 31744   ;;  %vm60_vm2 = vcmask 24576   ;;  %s1623_s0 = inlined_call_operand.vmem [shape: f32[2,16,16,4], index: 0, kind: input, shape index: {}]   ;;  %s1624_s1 = inlined_call_operand.vmem [shape: f32[2,16,16,4], index: 1, kind: input, shape index: {}]   ;;  %s1625_s2 = inlined_call_operand.hbm [shape: f32[1,1], index: 2, kind: output, shape index: {}]  }
   0x1   :  { %v15_v0 = vld [vmem:[%s1623_s0] sm:$0xff]  ;;  %v16_v1 = vld [vmem:[%s1623_s0 + $0x8] sm:$0xff]  ;;  %v892_v2 = vld [vmem:[%s1623_s0 + $0x10] sm:$0xff]  ;;  %13 = vst.msk [vmem:[#allocation2 + $0x4] sm:$0xf] %vm12_vm0, %v1148_v3 }
   0x2   :  { %v893_v4 = vld [vmem:[%s1623_s0 + $0x18] sm:$0xff]  ;;  %v20_v5 = vmax.f32 %v15_v0, %v892_v2  ;;  %v894_v6 = vld [vmem:[%s1623_s0 + $0x20] sm:$0xff]  ;;  %v895_v7 = vld [vmem:[%s1623_s0 + $0x28] sm:$0xff]  ;;  %14 = vst.msk [vmem:[#allocation2 + $0xc] sm:$0xf] %vm12_vm0, %v1148_v3 }
   0x3   :  { %v21_v8 = vmax.f32 %v16_v1, %v893_v4  ;;  %v896_v9 = vld [vmem:[%s1623_s0 + $0x30] sm:$0xff]  ;;  %v897_v11 = vld [vmem:[%s1623_s0 + $0x38] sm:$0xff]  ;;  %v898_v13 = vld [vmem:[%s1623_s0 + $0x40] sm:$0xff] }
   0x4   :  { %v25_v10 = vmax.f32 %v20_v5, %v894_v6  ;;  %v899_v14 = vld [vmem:[%s1623_s0 + $0x48] sm:$0xff]  ;;  %v900_v15 = vld [vmem:[%s1623_s0 + $0x50] sm:$0xff]  ;;  %v901_v17 = vld [vmem:[%s1623_s0 + $0x58] sm:$0xff] }
   0x5   :  { %v26_v12 = vmax.f32 %v21_v8, %v895_v7  ;;  %v906_v18 = vld [vmem:[%s1623_s0 + $0x80] sm:$0xff]  ;;  %v907_v19 = vld [vmem:[%s1623_s0 + $0x88] sm:$0xff]  ;;  %v908_v21 = vld [vmem:[%s1623_s0 + $0x90] sm:$0xff] }
   0x6   :  { %v30_v16 = vmax.f32 %v25_v10, %v896_v9  ;;  %v909_v22 = vld [vmem:[%s1623_s0 + $0x98] sm:$0xff]  ;;  %v910_v23 = vld [vmem:[%s1623_s0 + $0xa0] sm:$0xff]  ;;  %v903_v26 = vld [vmem:[%s1623_s0 + $0x68] sm:$0xff]  ;;  %v76_v27 = vmax.f32 %v906_v18, %v908_v21 }
   0x7   :  { %v31_v20 = vmax.f32 %v26_v12, %v897_v11  ;;  %v902_v25 = vld [vmem:[%s1623_s0 + $0x60] sm:$0xff]  ;;  %v77_v28 = vmax.f32 %v907_v19, %v909_v22  ;;  %v911_v29 = vld [vmem:[%s1623_s0 + $0xa8] sm:$0xff]  ;;  %v904_v31 = vld [vmem:[%s1623_s0 + $0x70] sm:$0xff] }
   0x8   :  { %v35_v24 = vmax.f32 %v30_v16, %v898_v13  ;;  %v912_v32 = vld [vmem:[%s1623_s0 + $0xb0] sm:$0xff]  ;;  %v913_v33 = vld [vmem:[%s1623_s0 + $0xb8] sm:$0xff]  ;;  %v81_v36 = vmax.f32 %v76_v27, %v910_v23  ;;  %v914_v38 = vld [vmem:[%s1623_s0 + $0xc0] sm:$0xff] }
   0x9   :  { %v36_v30 = vmax.f32 %v31_v20, %v899_v14  ;;  %v905_v35 = vld [vmem:[%s1623_s0 + $0x78] sm:$0xff]  ;;  %v82_v37 = vmax.f32 %v77_v28, %v911_v29  ;;  %v915_v39 = vld [vmem:[%s1623_s0 + $0xc8] sm:$0xff]  ;;  %v916_v41 = vld [vmem:[%s1623_s0 + $0xd0] sm:$0xff] }
   0xa   :  { %v40_v34 = vmax.f32 %v35_v24, %v900_v15  ;;  %v917_v42 = vld [vmem:[%s1623_s0 + $0xd8] sm:$0xff]  ;;  %v960_v43 = vld [vmem:[%s1623_s0 + $0x100] sm:$0xff]  ;;  %v86_v45 = vmax.f32 %v81_v36, %v912_v32  ;;  %v961_v47 = vld [vmem:[%s1623_s0 + $0x108] sm:$0xff] }
   0xb   :  { %v41_v40 = vmax.f32 %v36_v30, %v901_v17  ;;  %v87_v46 = vmax.f32 %v82_v37, %v913_v33  ;;  %v962_v48 = vld [vmem:[%s1623_s0 + $0x110] sm:$0xff]  ;;  %v963_v49 = vld [vmem:[%s1623_s0 + $0x118] sm:$0xff]  ;;  %v918_v51 = vld [vmem:[%s1623_s0 + $0xe0] sm:$0xff] }
   0xc   :  { %v45_v44 = vmax.f32 %v40_v34, %v902_v25  ;;  %v452_v52 = vmax.f32 %v960_v43, %v962_v48  ;;  %v453_v53 = vmax.f32 %v961_v47, %v963_v49  ;;  %v964_v54 = vld [vmem:[%s1623_s0 + $0x120] sm:$0xff]  ;;  %v965_v55 = vld [vmem:[%s1623_s0 + $0x128] sm:$0xff]  ;;  %v91_v57 = vmax.f32 %v86_v45, %v914_v38  ;;  %v966_v60 = vld [vmem:[%s1623_s0 + $0x130] sm:$0xff] }
   0xd   :  { %v46_v50 = vmax.f32 %v41_v40, %v903_v26  ;;  %v92_v58 = vmax.f32 %v87_v46, %v915_v39  ;;  %v919_v59 = vld [vmem:[%s1623_s0 + $0xe8] sm:$0xff]  ;;  %v967_v61 = vld [vmem:[%s1623_s0 + $0x138] sm:$0xff]  ;;  %v920_v63 = vld [vmem:[%s1623_s0 + $0xf0] sm:$0xff] }
   0xe   :  { %v50_v56 = vmax.f32 %v45_v44, %v904_v31  ;;  %v921_v0 = vld [vmem:[%s1623_s0 + $0xf8] sm:$0xff]  ;;  %v457_v1 = vmax.f32 %v452_v52, %v964_v54  ;;  %v458_v2 = vmax.f32 %v453_v53, %v965_v55  ;;  %v968_v3 = vld [vmem:[%s1623_s0 + $0x140] sm:$0xff]  ;;  %v96_v5 = vmax.f32 %v91_v57, %v916_v41  ;;  %v969_v7 = vld [vmem:[%s1623_s0 + $0x148] sm:$0xff] }
   0xf   :  { %v51_v62 = vmax.f32 %v46_v50, %v905_v35  ;;  %v97_v6 = vmax.f32 %v92_v58, %v917_v42  ;;  %v970_v8 = vld [vmem:[%s1623_s0 + $0x150] sm:$0xff]  ;;  %v971_v9 = vld [vmem:[%s1623_s0 + $0x158] sm:$0xff]  ;;  %v976_v14 = vld [vmem:[%s1623_s0 + $0x180] sm:$0xff] }
  0x10   :  { %v53_v4 = vsel %vm52_vm1, %v50_v56, -inf  ;;  %v462_v12 = vmax.f32 %v457_v1, %v966_v60  ;;  %v463_v13 = vmax.f32 %v458_v2, %v967_v61  ;;  %v977_v15 = vld [vmem:[%s1623_s0 + $0x188] sm:$0xff]  ;;  %v978_v16 = vld [vmem:[%s1623_s0 + $0x190] sm:$0xff]  ;;  %v101_v18 = vmax.f32 %v96_v5, %v918_v51  ;;  %v979_v20 = vld [vmem:[%s1623_s0 + $0x198] sm:$0xff] }
  0x11   :  { %v54_v10 = vrot.slane %v53_v4, 4  ;;  %v62_v11 = vsel %vm52_vm1, %v51_v62, -inf  ;;  %v102_v19 = vmax.f32 %v97_v6, %v919_v59  ;;  %v506_v21 = vmax.f32 %v976_v14, %v978_v16  ;;  %v980_v22 = vld [vmem:[%s1623_s0 + $0x1a0] sm:$0xff]  ;;  %v981_v23 = vld [vmem:[%s1623_s0 + $0x1a8] sm:$0xff]  ;;  %v982_v28 = vld [vmem:[%s1623_s0 + $0x1b0] sm:$0xff] }
  0x12   :  { %v63_v17 = vrot.slane %v62_v11, 4  ;;  %v467_v25 = vmax.f32 %v462_v12, %v968_v3  ;;  %v468_v26 = vmax.f32 %v463_v13, %v969_v7  ;;  %v507_v27 = vmax.f32 %v977_v15, %v979_v20  ;;  %v972_v32 = vld [vmem:[%s1623_s0 + $0x160] sm:$0xff]  ;;  %v973_v37 = vld [vmem:[%s1623_s0 + $0x168] sm:$0xff]  ;;  %v983_v39 = vld [vmem:[%s1623_s0 + $0x1b8] sm:$0xff] }
  0x13   :  { %v55_v24 = vmax.f32 %v53_v4, %v54_v10  ;;  %v106_v30 = vmax.f32 %v101_v18, %v920_v63  ;;  %v107_v31 = vmax.f32 %v102_v19, %v921_v0  ;;  %v511_v33 = vmax.f32 %v506_v21, %v980_v22  ;;  %v984_v40 = vld [vmem:[%s1623_s0 + $0x1c0] sm:$0xff]  ;;  %v974_v44 = vld [vmem:[%s1623_s0 + $0x170] sm:$0xff]  ;;  %v975_v50 = vld [vmem:[%s1623_s0 + $0x178] sm:$0xff] }
  0x14   :  { %v64_v29 = vmax.f32 %v62_v11, %v63_v17  ;;  %v472_v35 = vmax.f32 %v467_v25, %v970_v8  ;;  %v473_v36 = vmax.f32 %v468_v26, %v971_v9  ;;  %v512_v38 = vmax.f32 %v507_v27, %v981_v23  ;;  %v985_v51 = vld [vmem:[%s1623_s0 + $0x1c8] sm:$0xff]  ;;  %v986_v52 = vld [vmem:[%s1623_s0 + $0x1d0] sm:$0xff]  ;;  %v987_v61 = vld [vmem:[%s1623_s0 + $0x1d8] sm:$0xff] }
  0x15   :  { %v56_v34 = vrot.slane %v55_v24, 2  ;;  %v108_v42 = vsel %vm52_vm1, %v106_v30, -inf  ;;  %v116_v43 = vsel %vm52_vm1, %v107_v31, -inf  ;;  %v516_v45 = vmax.f32 %v511_v33, %v982_v28  ;;  %v988_v2 = vld [vmem:[%s1623_s0 + $0x1e0] sm:$0xff]  ;;  %v989_v3 = vld [vmem:[%s1623_s0 + $0x1e8] sm:$0xff]  ;;  %v922_v10 = vld [vmem:[%s1624_s1 + $0x10] sm:$0xff] }
  0x16   :  { %v65_v41 = vrot.slane %v64_v29, 2  ;;  %v109_v47 = vrot.slane %v108_v42, 4  ;;  %v117_v48 = vrot.slane %v116_v43, 4  ;;  %v477_v49 = vmax.f32 %v472_v35, %v972_v32  ;;  %v124_v4 = vld [vmem:[%s1624_s1] sm:$0xff]  ;;  %v125_v9 = vld [vmem:[%s1624_s1 + $0x8] sm:$0xff]  ;;  %v923_v11 = vld [vmem:[%s1624_s1 + $0x18] sm:$0xff] }
  0x17   :  { %v57_v46 = vmax.f32 %v55_v24, %v56_v34  ;;  %v478_v54 = vmax.f32 %v473_v36, %v973_v37  ;;  %v517_v55 = vmax.f32 %v512_v38, %v983_v39  ;;  %v521_v56 = vmax.f32 %v516_v45, %v984_v40  ;;  %v990_v16 = vld [vmem:[%s1623_s0 + $0x1f0] sm:$0xff]  ;;  %v991_v21 = vld [vmem:[%s1623_s0 + $0x1f8] sm:$0xff]  ;;  %v924_v22 = vld [vmem:[%s1624_s1 + $0x20] sm:$0xff] }
  0x18   :  { %v66_v53 = vmax.f32 %v64_v29, %v65_v41  ;;  %v110_v58 = vmax.f32 %v108_v42, %v109_v47  ;;  %v118_v59 = vmax.f32 %v116_v43, %v117_v48  ;;  %v482_v60 = vmax.f32 %v477_v49, %v974_v44  ;;  %v925_v23 = vld [vmem:[%s1624_s1 + $0x28] sm:$0xff]  ;;  %v926_v32 = vld [vmem:[%s1624_s1 + $0x30] sm:$0xff]  ;;  %v927_v37 = vld [vmem:[%s1624_s1 + $0x38] sm:$0xff] }
  0x19   :  { %v58_v57 = vrot.slane %v57_v46, 1  ;;  %v483_v63 = vmax.f32 %v478_v54, %v975_v50  ;;  %v522_v0 = vmax.f32 %v517_v55, %v985_v51  ;;  %v526_v1 = vmax.f32 %v521_v56, %v986_v52  ;;  %v936_v38 = vld [vmem:[%s1624_s1 + $0x80] sm:$0xff]  ;;  %v938_v39 = vld [vmem:[%s1624_s1 + $0x90] sm:$0xff]  ;;  %v937_v45 = vld [vmem:[%s1624_s1 + $0x88] sm:$0xff] }
  0x1a   :  { %v67_v62 = vrot.slane %v66_v53, 1  ;;  %v111_v6 = vrot.slane %v110_v58, 2  ;;  %v119_v7 = vrot.slane %v118_v59, 2  ;;  %v484_v8 = vsel %vm52_vm1, %v482_v60, -inf  ;;  %v928_v44 = vld [vmem:[%s1624_s1 + $0x40] sm:$0xff]  ;;  %v929_v51 = vld [vmem:[%s1624_s1 + $0x48] sm:$0xff] }
  0x1b   :  { %v59_v5 = vmax.f32 %v57_v46, %v58_v57  ;;  %v485_v13 = vrot.slane %v484_v8, 4  ;;  %v492_v14 = vsel %vm52_vm1, %v483_v63, -inf  ;;  %v527_v15 = vmax.f32 %v522_v0, %v987_v61  ;;  %v939_v46 = vld [vmem:[%s1624_s1 + $0x98] sm:$0xff]  ;;  %v940_v52 = vld [vmem:[%s1624_s1 + $0xa0] sm:$0xff]  ;;  %v930_v56 = vld [vmem:[%s1624_s1 + $0x50] sm:$0xff] }
  0x1c   :  { %v68_v12 = vmax.f32 %v66_v53, %v67_v62  ;;  %v112_v17 = vmax.f32 %v110_v58, %v111_v6  ;;  %v120_v18 = vmax.f32 %v118_v59, %v119_v7  ;;  %v493_v19 = vrot.slane %v492_v14, 4  ;;  %v931_v57 = vld [vmem:[%s1624_s1 + $0x58] sm:$0xff]  ;;  %v941_v59 = vld [vmem:[%s1624_s1 + $0xa8] sm:$0xff]  ;;  %v932_v63 = vld [vmem:[%s1624_s1 + $0x60] sm:$0xff] }
  0x1d   :  { %61 = vst.msk [vmem:[#allocation2] sm:$0x1] %vm60_vm2, %v59_v5  ;;  %v531_v20 = vmax.f32 %v526_v1, %v988_v2  ;;  %v486_v24 = vmax.f32 %v484_v8, %v485_v13  ;;  %v532_v25 = vmax.f32 %v527_v15, %v989_v3  ;;  %v129_v26 = vmax.f32 %v124_v4, %v922_v10  ;;  %v933_v0 = vld [vmem:[%s1624_s1 + $0x68] sm:$0xff]  ;;  %v942_v2 = vld [vmem:[%s1624_s1 + $0xb0] sm:$0xff]  ;;  %v943_v7 = vld [vmem:[%s1624_s1 + $0xb8] sm:$0xff] }
  0x1e   :  { %69 = vst.msk [vmem:[#allocation2 + $0x1] sm:$0x1] %vm60_vm2, %v68_v12  ;;  %v130_v27 = vmax.f32 %v125_v9, %v923_v11  ;;  %v113_v28 = vrot.slane %v112_v17, 1  ;;  %v121_v29 = vrot.slane %v120_v18, 1  ;;  %v494_v30 = vmax.f32 %v492_v14, %v493_v19  ;;  %v992_v8 = vld [vmem:[%s1624_s1 + $0x100] sm:$0xff]  ;;  %v994_v9 = vld [vmem:[%s1624_s1 + $0x110] sm:$0xff] }
  0x1f   :  { %v536_v31 = vmax.f32 %v531_v20, %v990_v16  ;;  %v487_v33 = vrot.slane %v486_v24, 2  ;;  %v537_v34 = vmax.f32 %v532_v25, %v991_v21  ;;  %v134_v35 = vmax.f32 %v129_v26, %v924_v22  ;;  %v944_v14 = vld [vmem:[%s1624_s1 + $0xc0] sm:$0xff]  ;;  %v993_v15 = vld [vmem:[%s1624_s1 + $0x108] sm:$0xff]  ;;  %v995_v16 = vld [vmem:[%s1624_s1 + $0x118] sm:$0xff] }
  0x20   :  { %v135_v36 = vmax.f32 %v130_v27, %v925_v23  ;;  %v114_v40 = vmax.f32 %v112_v17, %v113_v28  ;;  %v122_v41 = vmax.f32 %v120_v18, %v121_v29  ;;  %v495_v42 = vrot.slane %v494_v30, 2  ;;  %v934_v20 = vld [vmem:[%s1624_s1 + $0x70] sm:$0xff]  ;;  %v945_v22 = vld [vmem:[%s1624_s1 + $0xc8] sm:$0xff]  ;;  %v996_v23 = vld [vmem:[%s1624_s1 + $0x120] sm:$0xff] }
  0x21   :  { %v538_v43 = vsel %vm52_vm1, %v536_v31, -inf  ;;  %v488_v47 = vmax.f32 %v486_v24, %v487_v33  ;;  %v546_v49 = vsel %vm52_vm1, %v537_v34, -inf  ;;  %v139_v50 = vmax.f32 %v134_v35, %v926_v32  ;;  %v935_v26 = vld [vmem:[%s1624_s1 + $0x78] sm:$0xff]  ;;  %v946_v28 = vld [vmem:[%s1624_s1 + $0xd0] sm:$0xff]  ;;  %v948_v34 = vld [vmem:[%s1624_s1 + $0xe0] sm:$0xff] }
  0x22   :  { %v539_v48 = vrot.slane %v538_v43, 4  ;;  %115 = vst.msk [vmem:[#allocation2 + $0x2] sm:$0x1] %vm60_vm2, %v114_v40  ;;  %123 = vst.msk [vmem:[#allocation2 + $0x3] sm:$0x1] %vm60_vm2, %v122_v41  ;;  %v496_v53 = vmax.f32 %v494_v30, %v495_v42  ;;  %v547_v54 = vrot.slane %v546_v49, 4  ;;  %v140_v55 = vmax.f32 %v135_v36, %v927_v37 }
  0x23   :  { %v183_v58 = vmax.f32 %v936_v38, %v938_v39  ;;  %v489_v60 = vrot.slane %v488_v47, 1  ;;  %v144_v62 = vmax.f32 %v139_v50, %v928_v44  ;;  %v184_v1 = vmax.f32 %v937_v45, %v939_v46  ;;  %v947_v33 = vld [vmem:[%s1624_s1 + $0xd8] sm:$0xff]  ;;  %v997_v36 = vld [vmem:[%s1624_s1 + $0x128] sm:$0xff] }
  0x24   :  { %v540_v61 = vmax.f32 %v538_v43, %v539_v48  ;;  %v497_v3 = vrot.slane %v496_v53, 1  ;;  %v548_v4 = vmax.f32 %v546_v49, %v547_v54  ;;  %v145_v5 = vmax.f32 %v140_v55, %v929_v51  ;;  %v949_v41 = vld [vmem:[%s1624_s1 + $0xe8] sm:$0xff]  ;;  %v998_v43 = vld [vmem:[%s1624_s1 + $0x130] sm:$0xff]  ;;  %v999_v48 = vld [vmem:[%s1624_s1 + $0x138] sm:$0xff] }
  0x25   :  { %v188_v6 = vmax.f32 %v183_v58, %v940_v52  ;;  %v490_v10 = vmax.f32 %v488_v47, %v489_v60  ;;  %v149_v12 = vmax.f32 %v144_v62, %v930_v56  ;;  %v189_v13 = vmax.f32 %v184_v1, %v941_v59  ;;  %v1008_v49 = vld [vmem:[%s1624_s1 + $0x180] sm:$0xff]  ;;  %v1009_v50 = vld [vmem:[%s1624_s1 + $0x188] sm:$0xff]  ;;  %v1010_v55 = vld [vmem:[%s1624_s1 + $0x190] sm:$0xff] }
  0x26   :  { %v541_v11 = vrot.slane %v540_v61, 2  ;;  %v498_v17 = vmax.f32 %v496_v53, %v497_v3  ;;  %v549_v18 = vrot.slane %v548_v4, 2  ;;  %v150_v19 = vmax.f32 %v145_v5, %v931_v57  ;;  %v1011_v56 = vld [vmem:[%s1624_s1 + $0x198] sm:$0xff] }
  0x27   :  { %v193_v21 = vmax.f32 %v188_v6, %v942_v2  ;;  %v154_v25 = vmax.f32 %v149_v12, %v932_v63  ;;  %v194_v27 = vmax.f32 %v189_v13, %v943_v7  ;;  %v560_v29 = vmax.f32 %v992_v8, %v994_v9 }
  0x28   :  { %v542_v24 = vmax.f32 %v540_v61, %v541_v11  ;;  %v550_v30 = vmax.f32 %v548_v4, %v549_v18  ;;  %v155_v31 = vmax.f32 %v150_v19, %v933_v0  ;;  %v561_v35 = vmax.f32 %v993_v15, %v995_v16 }
  0x29   :  { %v198_v32 = vmax.f32 %v193_v21, %v944_v14  ;;  %v1476_v37 = vld [vmem:[#allocation2] sm:$0xff]  ;;  %v159_v39 = vmax.f32 %v154_v25, %v934_v20  ;;  %v199_v40 = vmax.f32 %v194_v27, %v945_v22  ;;  %v565_v42 = vmax.f32 %v560_v29, %v996_v23 }
  0x2a   :  { %v543_v38 = vrot.slane %v542_v24, 1  ;;  %v233_v44 = vmul.f32 %v1476_v37, %v1476_v37  ;;  %491 = vst.msk [vmem:[#allocation2] sm:$0x1] %vm60_vm2, %v490_v10  ;;  %499 = vst.msk [vmem:[#allocation2 + $0x1] sm:$0x1] %vm60_vm2, %v498_v17  ;;  %v551_v45 = vrot.slane %v550_v30, 1  ;;  %v160_v46 = vmax.f32 %v155_v31, %v935_v26  ;;  %1052 = vmatprep.mubr.msk.f32.mxu0 %vm52_vm1, %v1476_v37 }
  0x2b   :  { %v203_v47 = vmax.f32 %v198_v32, %v946_v28  ;;  %v161_v52 = vsel %vm52_vm1, %v159_v39, -inf  ;;  %v204_v53 = vmax.f32 %v199_v40, %v947_v33  ;;  %v566_v54 = vmax.f32 %v561_v35, %v997_v36 }
  0x2c   :  { %v544_v51 = vmax.f32 %v542_v24, %v543_v38 }
  0x2d   :  { %7 = vsyncpa [#allocation4], 0  ;;  %v235_v57 = vsel %vm52_vm1, %v233_v44, 0.0  ;;  %v552_v58 = vmax.f32 %v550_v30, %v551_v45  ;;  %v162_v59 = vrot.slane %v161_v52, 4  ;;  %v169_v60 = vsel %vm52_vm1, %v160_v46, -inf  ;;  %v950_v61 = vld [vmem:[%s1624_s1 + $0xf0] sm:$0xff] }
  0x2e   :  { %v951_v62 = vld [vmem:[%s1624_s1 + $0xf8] sm:$0xff]  ;;  %v1000_v63 = vld [vmem:[%s1624_s1 + $0x140] sm:$0xff]  ;;  %545 = vst.msk [vmem:[#allocation2 + $0x2] sm:$0x1] %vm60_vm2, %v544_v51  ;;  %236 = vadd.xlane.f32.xlu0 %v235_v57  ;;  %v170_v0 = vrot.slane %v169_v60, 4  ;;  %v208_v1 = vmax.f32 %v203_v47, %v948_v34  ;;  %v209_v2 = vmax.f32 %v204_v53, %v949_v41  ;;  %v570_v3 = vmax.f32 %v565_v42, %v998_v43  ;;  %v1001_v4 = vld [vmem:[%s1624_s1 + $0x148] sm:$0xff] }
  0x2f   :  { %v1012_v5 = vld [vmem:[%s1624_s1 + $0x1a0] sm:$0xff]  ;;  %v1013_v6 = vld [vmem:[%s1624_s1 + $0x1a8] sm:$0xff]  ;;  %553 = vst.msk [vmem:[#allocation2 + $0x3] sm:$0x1] %vm60_vm2, %v552_v58  ;;  %v163_v7 = vmax.f32 %v161_v52, %v162_v59  ;;  %v571_v8 = vmax.f32 %v566_v54, %v999_v48  ;;  %v1002_v9 = vld [vmem:[%s1624_s1 + $0x150] sm:$0xff]  ;;  %v614_v10 = vmax.f32 %v1008_v49, %v1010_v55  ;;  %v615_v11 = vmax.f32 %v1009_v50, %v1011_v56  ;;  %s1150_s9 = smov 120  }
  0x30   :  { %v171_v12 = vmax.f32 %v169_v60, %v170_v0  ;;  %v213_v13 = vmax.f32 %v208_v1, %v950_v61  ;;  %v214_v14 = vmax.f32 %v209_v2, %v951_v62  ;;  %v575_v15 = vmax.f32 %v570_v3, %v1000_v63  ;;  %v1003_v16 = vld [vmem:[%s1624_s1 + $0x158] sm:$0xff]  ;;  %v1004_v19 = vld [vmem:[%s1624_s1 + $0x160] sm:$0xff]  ;;  %v1014_v22 = vld [vmem:[%s1624_s1 + $0x1b0] sm:$0xff]  ;;  %s1151_s10 = smov [#allocation3]  }
  0x31   :  { %v164_v17 = vrot.slane %v163_v7, 2  ;;  %v576_v18 = vmax.f32 %v571_v8, %v1001_v4  ;;  %v619_v20 = vmax.f32 %v614_v10, %v1012_v5  ;;  %v620_v21 = vmax.f32 %v615_v11, %v1013_v6  ;;  %v1015_v23 = vld [vmem:[%s1624_s1 + $0x1b8] sm:$0xff]  ;;  %v1005_v28 = vld [vmem:[%s1624_s1 + $0x168] sm:$0xff]  ;;  %v1006_v33 = vld [vmem:[%s1624_s1 + $0x170] sm:$0xff]  ;;  %s884_s11 = sshll.u32 %s1151_s10, 4  ;;  %s885_s11 = int_to_ptr.vmem [resolvable:$true] %s884_s11 }
  0x32   :  { %v172_v24 = vrot.slane %v171_v12, 2  ;;  %v215_v25 = vsel %vm52_vm1, %v213_v13, -inf  ;;  %v223_v26 = vsel %vm52_vm1, %v214_v14, -inf  ;;  %v580_v27 = vmax.f32 %v575_v15, %v1002_v9  ;;  %v1016_v34 = vld [vmem:[%s1624_s1 + $0x1c0] sm:$0xff]  ;;  %v1017_v35 = vld [vmem:[%s1624_s1 + $0x1c8] sm:$0xff]  ;;  %v1007_v39 = vld [vmem:[%s1624_s1 + $0x178] sm:$0xff]  ;;  %p1129_p1 = scmp.lt.s32.totalorder %s885_s11, %s885_s11 }
  0x33   :  { %v165_v29 = vmax.f32 %v163_v7, %v164_v17  ;;  %v216_v30 = vrot.slane %v215_v25, 4  ;;  %v224_v31 = vrot.slane %v223_v26, 4  ;;  %v581_v32 = vmax.f32 %v576_v18, %v1003_v16  ;;  %v1018_v46 = vld [vmem:[%s1624_s1 + $0x1d0] sm:$0xff]  ;;  %v1019_v47 = vld [vmem:[%s1624_s1 + $0x1d8] sm:$0xff]  ;;  %v1020_v56 = vld [vmem:[%s1624_s1 + $0x1e0] sm:$0xff]  ;;  %s1124_s14 = scalar_lea.vmem %s885_s11, 16 }
  0x34   :  { %v173_v36 = vmax.f32 %v171_v12, %v172_v24  ;;  %v585_v38 = vmax.f32 %v580_v27, %v1004_v19  ;;  %v624_v40 = vmax.f32 %v619_v20, %v1014_v22  ;;  %v625_v41 = vmax.f32 %v620_v21, %v1015_v23  ;;  %v1021_v57 = vld [vmem:[%s1624_s1 + $0x1e8] sm:$0xff]  ;;  %v1022_v3 = vld [vmem:[%s1624_s1 + $0x1f0] sm:$0xff]  ;;  %v1023_v4 = vld [vmem:[%s1624_s1 + $0x1f8] sm:$0xff]  ;;  %s1149_s1 = smov 8   ;;  %p1125_p0 = scmp.ne.s32.totalorder %s885_s11, %s1124_s14 }
  0x35   :  { %v166_v42 = vrot.slane %v165_v29, 1  ;;  %v217_v43 = vmax.f32 %v215_v25, %v216_v30  ;;  %v225_v44 = vmax.f32 %v223_v26, %v224_v31  ;;  %v586_v45 = vmax.f32 %v581_v32, %v1005_v28  ;;  %vm1077_vm3 = vmpackc.low %vm52_vm1, %vm52_vm1  ;;  %s1128_s15 = scalar_lea.vmem %s885_s11, 32 }
  0x36   :  { %v174_v48 = vrot.slane %v173_v36, 1  ;;  %v590_v49 = vmax.f32 %v585_v38, %v1006_v33  ;;  %v629_v50 = vmax.f32 %v624_v40, %v1016_v34  ;;  %v630_v51 = vmax.f32 %v625_v41, %v1017_v35  ;;  %v1572_v58 = vld [vmem:[#allocation2] sm:$0xff]  ;;  %p1130_p2 = scmp.lt.s32.totalorder %s1128_s15, %s1124_s14 }
  0x37   :  { %v167_v52 = vmax.f32 %v165_v29, %v166_v42  ;;  %v218_v53 = vrot.slane %v217_v43, 2  ;;  %v226_v54 = vrot.slane %v225_v44, 2  ;;  %v591_v55 = vmax.f32 %v586_v45, %v1007_v39 }
  0x38   :  { %v175_v59 = vmax.f32 %v173_v36, %v174_v48  ;;  %v592_v60 = vsel %vm52_vm1, %v590_v49, -inf  ;;  %v634_v61 = vmax.f32 %v629_v50, %v1018_v46  ;;  %v635_v62 = vmax.f32 %v630_v51, %v1019_v47  ;;  %p1131_p3 = por %p1130_p2, %p1129_p1 }
  0x39   :  { %168 = vst.msk [vmem:[#allocation2 + $0x8] sm:$0x1] %vm60_vm2, %v167_v52  ;;  %v219_v63 = vmax.f32 %v217_v43, %v218_v53  ;;  %v227_v0 = vmax.f32 %v225_v44, %v226_v54  ;;  %v593_v1 = vrot.slane %v592_v60, 4  ;;  %v600_v2 = vsel %vm52_vm1, %v591_v55, -inf }
  0x3a   :  { %176 = vst.msk [vmem:[#allocation2 + $0x9] sm:$0x1] %vm60_vm2, %v175_v59  ;;  %v601_v5 = vrot.slane %v600_v2, 4  ;;  %v639_v6 = vmax.f32 %v634_v61, %v1020_v56  ;;  %v640_v7 = vmax.f32 %v635_v62, %v1021_v57  ;;  %v664_v8 = vmul.f32 %v1572_v58, %v1572_v58  ;;  %p1132_p4 = pnand %p1131_p3, %p1125_p0 }
  0x3b   :  { %v220_v9 = vrot.slane %v219_v63, 1  ;;  %v228_v10 = vrot.slane %v227_v0, 1  ;;  %v594_v11 = vmax.f32 %v592_v60, %v593_v1  ;;  %vm340_vm6 = vcmask 7168  }
  0x3c   :  { %v602_v12 = vmax.f32 %v600_v2, %v601_v5  ;;  %v644_v13 = vmax.f32 %v639_v6, %v1022_v3  ;;  %v645_v14 = vmax.f32 %v640_v7, %v1023_v4  ;;  %v666_v15 = vsel %vm52_vm1, %v664_v8, 0.0  ;;  %vm1083_vm13 = vmpackc.low %vm340_vm6, %vm340_vm6 }
  0x3d   :  { %v221_v16 = vmax.f32 %v219_v63, %v220_v9  ;;  %v229_v17 = vmax.f32 %v227_v0, %v228_v10  ;;  %v595_v18 = vrot.slane %v594_v11, 2  ;;  %667 = vadd.xlane.f32.xlu1 %v666_v15  ;;  %vm434_vm14 = vcmask 64512  }
  0x3e   :  { %v603_v19 = vrot.slane %v602_v12, 2  ;;  %v646_v20 = vsel %vm52_vm1, %v644_v13, -inf  ;;  %v654_v21 = vsel %vm52_vm1, %v645_v14, -inf  ;;  %vm876_vm15 = vcmask 0  }
  0x3f   :  { %222 = vst.msk [vmem:[#allocation2 + $0xa] sm:$0x1] %vm60_vm2, %v221_v16  ;;  %230 = vst.msk [vmem:[#allocation2 + $0xb] sm:$0x1] %vm60_vm2, %v229_v17  ;;  %v596_v22 = vmax.f32 %v594_v11, %v595_v18  ;;  %v647_v23 = vrot.slane %v646_v20, 4  ;;  %v655_v24 = vrot.slane %v654_v21, 4 }
  0x40   :  { %v604_v25 = vmax.f32 %v602_v12, %v603_v19 }
  0x41   :  { %v597_v26 = vrot.slane %v596_v22, 1  ;;  %v648_v27 = vmax.f32 %v646_v20, %v647_v23  ;;  %v656_v28 = vmax.f32 %v654_v21, %v655_v24 }
  0x42   :  { %v605_v29 = vrot.slane %v604_v25, 1 }
  0x43   :  { %v598_v30 = vmax.f32 %v596_v22, %v597_v26  ;;  %v649_v31 = vrot.slane %v648_v27, 2  ;;  %v657_v32 = vrot.slane %v656_v28, 2 }
  0x44   :  { %v606_v33 = vmax.f32 %v604_v25, %v605_v29 }
  0x45   :  { %v650_v34 = vmax.f32 %v648_v27, %v649_v31  ;;  %v658_v35 = vmax.f32 %v656_v28, %v657_v32 }
  0x46   :  { %v232_v36 = vld [vmem:[#allocation2 + $0x8] sm:$0xff] }
  0x47   :  { %v234_v38 = vmul.f32 %v232_v36, %v232_v36  ;;  %599 = vst.msk [vmem:[#allocation2 + $0x8] sm:$0x1] %vm60_vm2, %v598_v30  ;;  %607 = vst.msk [vmem:[#allocation2 + $0x9] sm:$0x1] %vm60_vm2, %v606_v33  ;;  %v651_v39 = vrot.slane %v650_v34, 1  ;;  %v659_v40 = vrot.slane %v658_v35, 1  ;;  %v1076_v48 = vpack.c.bf16 %v232_v36, %v1476_v37 }
  0x49   :  { %v238_v41 = vsel %vm52_vm1, %v234_v38, 0.0  ;;  %v652_v42 = vmax.f32 %v650_v34, %v651_v39  ;;  %v660_v43 = vmax.f32 %v658_v35, %v659_v40  ;;  %1078 = vmatprep.subr.msk.bf16.mxu0 %vm1077_vm3, %v1076_v48 }
  0x4a   :  { %239 = vadd.xlane.f32.xlu0 %v238_v41  ;;  %1081 = vmatpush3.bf16.xpose.msk.msra.mxu0 %vm1077_vm3, %v1076_v48 }
  0x4b   :  { %653 = vst.msk [vmem:[#allocation2 + $0xa] sm:$0x1] %vm60_vm2, %v652_v42  ;;  %661 = vst.msk [vmem:[#allocation2 + $0xb] sm:$0x1] %vm60_vm2, %v660_v43 }
  0x51   :  { %1053 = vmatmul.mubr.msk.f32.vlgmr.msra.gmra.mrb[0].mxu0 %vm52_vm1, %v232_v36 }
  0x52   :  { %v663_v44 = vld [vmem:[#allocation2 + $0x8] sm:$0xff]  ;;  %1066 = vmatprep.mubr.msk.f32.mxu0 %vm52_vm1, %v1572_v58 }
  0x53   :  { %v665_v45 = vmul.f32 %v663_v44, %v663_v44  ;;  %v1088_v47 = vpack.c.bf16 %v663_v44, %v1572_v58 }
  0x55   :  { %v669_v46 = vsel %vm52_vm1, %v665_v45, 0.0  ;;  %1090 = vmatprep.subr.msk.bf16.mxu0 %vm1077_vm3, %v1088_v47 }
  0x56   :  { %670 = vadd.xlane.f32.xlu1 %v669_v46  ;;  %1093 = vmatpush3.bf16.xpose.msk.msra.mxu0 %vm1077_vm3, %v1088_v47 }
  0x5d   :  { %1067 = vmatmul.mubr.msk.f32.vlgmr.msra.gmra.mrb[2].mxu0 %vm52_vm1, %v663_v44 }
  0xbb   :  { %v237_v49 = vpop.xlane.xlu0 %236 }
  0xbc   :  { %1108 = vrsqrt.f32 %v237_v49  ;;  %vm243_vm4 = vcmp.eq.f32.partialorder %v237_v49, inf  ;;  %v246_v37 = vand.u32 2147483648, %v237_v49  ;;  %vm245_vm5 = vcmp.eq.f32.partialorder %v237_v49, 0.0 }
  0xc6   :  { %v1109_v50 = vpop.eup %1108 }
  0xc7   :  { %v242_v51 = vmul.f32 %v1109_v50, %v237_v49 }
  0xc9   :  { %v244_v52 = vsel %vm243_vm4, %v237_v49, %v242_v51 }
  0xca   :  { %v247_v53 = vsel %vm245_vm5, %v246_v37, %v244_v52  ;;  %v668_v55 = vpop.xlane.xlu1 %667 }
  0xcb   :  { %v255_v54 = vadd.f32 1e-08, %v247_v53  ;;  %vm674_vm9 = vcmp.eq.f32.partialorder %v668_v55, inf  ;;  %v677_v4 = vand.u32 2147483648, %v668_v55  ;;  %vm676_vm10 = vcmp.eq.f32.partialorder %v668_v55, 0.0 }
  0xcd   :  { %1110 = vrcp.f32 %v255_v54 }
  0xd7   :  { %v240_v56 = vpop.xlane.xlu0 %239  ;;  %v1111_v57 = vpop.eup %1110 }
  0xd8   :  { %1112 = vrsqrt.f32 %v240_v56  ;;  %1059 = vmatprep.mubr.msk.f32.mxu1 %vm340_vm6, %v1111_v57  ;;  %vm250_vm7 = vcmp.eq.f32.partialorder %v240_v56, inf  ;;  %v253_v62 = vand.u32 2147483648, %v240_v56  ;;  %vm252_vm8 = vcmp.eq.f32.partialorder %v240_v56, 0.0 }
  0xd9   :  { %1114 = vrsqrt.f32 %v668_v55 }
  0xe2   :  { %v1113_v58 = vpop.eup %1112 }
  0xe3   :  { %v1115_v59 = vpop.eup %1114  ;;  %v249_v60 = vmul.f32 %v1113_v58, %v240_v56  ;;  %v671_v61 = vpop.xlane.xlu1 %670 }
  0xe4   :  { %1116 = vrsqrt.f32 %v671_v61  ;;  %v673_v0 = vmul.f32 %v1115_v59, %v668_v55  ;;  %vm681_vm11 = vcmp.eq.f32.partialorder %v671_v61, inf  ;;  %v684_v9 = vand.u32 2147483648, %v671_v61 }
  0xe5   :  { %v251_v63 = vsel %vm250_vm7, %v240_v56, %v249_v60  ;;  %vm683_vm12 = vcmp.eq.f32.partialorder %v671_v61, 0.0 }
  0xe6   :  { %v254_v1 = vsel %vm252_vm8, %v253_v62, %v251_v63  ;;  %v675_v3 = vsel %vm674_vm9, %v668_v55, %v673_v0 }
  0xe7   :  { %v256_v2 = vadd.f32 1e-08, %v254_v1  ;;  %v678_v5 = vsel %vm676_vm10, %v677_v4, %v675_v3 }
  0xe8   :  { %v686_v8 = vadd.f32 1e-08, %v678_v5 }
  0xe9   :  { %1118 = vrcp.f32 %v256_v2 }
  0xea   :  { %1120 = vrcp.f32 %v686_v8 }
  0xee   :  { %v1117_v6 = vpop.eup %1116 }
  0xef   :  { %v680_v7 = vmul.f32 %v1117_v6, %v671_v61 }
  0xf1   :  { %v682_v10 = vsel %vm681_vm11, %v671_v61, %v680_v7 }
  0xf2   :  { %v685_v11 = vsel %vm683_vm12, %v684_v9, %v682_v10 }
  0xf3   :  { %v1119_v12 = vpop.eup %1118  ;;  %v687_v13 = vadd.f32 1e-08, %v685_v11 }
  0xf4   :  { %v1082_v14 = vpack.c.bf16 %v1119_v12, %v1111_v57  ;;  %v1121_v15 = vpop.eup %1120 }
  0xf5   :  { %1122 = vrcp.f32 %v687_v13 }
  0xf6   :  { %1084 = vmatprep.subr.msk.bf16.mxu1 %vm1083_vm13, %v1082_v14 }
  0xf7   :  { %1087 = vmatpush3.bf16.xpose.msk.msra.mxu1 %vm1083_vm13, %v1082_v14 }
  0xfe   :  { %1060 = vmatmul.mubr.msk.f32.vlgmr.msra.gmra.mrb[0].mxu1 %vm340_vm6, %v1119_v12 }
  0xff   :  { %v1123_v16 = vpop.eup %1122  ;;  %1073 = vmatprep.mubr.msk.f32.mxu1 %vm340_vm6, %v1121_v15 }
 0x100   :  { %v1094_v17 = vpack.c.bf16 %v1123_v16, %v1121_v15 }
 0x102   :  { %1096 = vmatprep.subr.msk.bf16.mxu1 %vm1083_vm13, %v1094_v17 }
 0x103   :  { %1099 = vmatpush3.bf16.xpose.msk.msra.mxu1 %vm1083_vm13, %v1094_v17 }
 0x10a   :  { %1074 = vmatmul.mubr.msk.f32.vlgmr.msra.gmra.mrb[2].mxu1 %vm340_vm6, %v1123_v16 }
 0x124   :  { %v1054_v18 = vpop.f32.mrb[0].mxu0 }
 0x125   :  { %v331_v19 = vpop.f32.mrb[1].mxu0 }
 0x130   :  { %v1068_v20 = vpop.f32.mrb[2].mxu0 }
 0x131   :  { %v762_v21 = vpop.f32.mrb[3].mxu0 }
 0x1d1   :  { %v1061_v22 = vpop.f32.mrb[0].mxu1 }
 0x1d2   :  { %v423_v23 = vmul.f32 %v1061_v22, %v1054_v18  ;;  %v413_v24 = vpop.f32.mrb[1].mxu1 }
 0x1d3   :  { %v422_v25 = vmul.f32 %v413_v24, %v331_v19 }
 0x1d5   :  { %425 = vrot.lane.b32.xlu0 %v422_v25, %s1149_s1 }
 0x1dd   :  { %v1075_v26 = vpop.f32.mrb[2].mxu1 }
 0x1de   :  { %v853_v27 = vmul.f32 %v1075_v26, %v1068_v20  ;;  %v843_v28 = vpop.f32.mrb[3].mxu1 }
 0x1df   :  { %v852_v29 = vmul.f32 %v843_v28, %v762_v21 }
 0x1e1   :  { %855 = vrot.lane.b32.xlu1 %v852_v29, %s1149_s1 }
 0x247   :  { %v426_v30 = vpop.permute.xlu0 %425 }
 0x248   :  { %v428_v31 = vsub.f32 %v423_v23, %v426_v30 }
 0x24a   :  { %v429_v32 = vmul.f32 %v428_v31, %v428_v31 }
 0x24c   :  { %431 = vrot.lane.b32.xlu1 %v429_v32, %s1150_s9 }
 0x253   :  { %v856_v33 = vpop.permute.xlu1 %855 }
 0x254   :  { %v858_v34 = vsub.f32 %v853_v27, %v856_v33 }
 0x256   :  { %v859_v35 = vmul.f32 %v858_v34, %v858_v34 }
 0x258   :  { %861 = vrot.lane.b32.xlu1 %v859_v35, %s1150_s9 }
 0x2be   :  { %v432_v36 = vpop.permute.xlu1 %431 }
 0x2bf   :  { %v435_v38 = vsel %vm434_vm14, %v432_v36, 0.0 }
 0x2c0   :  { %436 = vadd.xlane.f32.xlu0 %v435_v38 }
 0x2ca   :  { %v862_v39 = vpop.permute.xlu1 %861 }
 0x2cb   :  { %v864_v40 = vsel %vm434_vm14, %v862_v39, 0.0 }
 0x2cc   :  { %865 = vadd.xlane.f32.xlu1 %v864_v40 }
 0x34d   :  { %v437_v41 = vpop.xlane.xlu0 %436 }
 0x34e   :  { %v438_v42 = vrot.slane %v437_v41, 4 }
 0x350   :  { %v439_v43 = vadd.f32 %v438_v42, %v437_v41 }
 0x352   :  { %v440_v44 = vrot.slane %v439_v43, 2 }
 0x354   :  { %v441_v45 = vadd.f32 %v440_v44, %v439_v43 }
 0x356   :  { %v442_v46 = vrot.slane %v441_v45, 1 }
 0x358   :  { %v443_v47 = vadd.f32 %v442_v46, %v441_v45 }
 0x359   :  { %v866_v48 = vpop.xlane.xlu1 %865 }
 0x35a   :  { %v867_v49 = vrot.slane %v866_v48, 4  ;;  %1100 = vpush %v443_v47 }
 0x35c   :  { %v868_v50 = vadd.f32 %v867_v49, %v866_v48 }
 0x35e   :  { %v869_v51 = vrot.slane %v868_v50, 2 }
 0x360   :  { %v870_v37 = vadd.f32 %v869_v51, %v868_v50 }
 0x362   :  { %v871_v52 = vrot.slane %v870_v37, 1 }
 0x364   :  { %v872_v53 = vadd.f32 %v871_v52, %v870_v37 }
 0x366   :  { %1102 = vpush %v872_v53 }
 0x38b   :  { %s1101_s0 = spop %1100 }
 0x397   :  { %s1103_s12 = spop %1102 }
 0x398   :  { %s874_s13 = sadd.f32 %s1103_s12, %s1101_s0 }
 0x39a   :  { %v875_v54 = vstv %s874_s13 }
 0x39b   :  { %877 = vst.msk [vmem:[#allocation3] sm:$0x1] %vm876_vm15, %v875_v54 }
 0x39c   :  { %1135 = shalt.err (!%p1132_p4)
}
 0x39d   :  { %s1136_s18 = scalar_lea.hbm %s1625_s2, 16 }
 0x39e   :  { %p1137_p5 = scmp.ne.s32.totalorder %s1625_s2, %s1136_s18  ;;  %p1140_p6 = scmp.lt.u32.totalorder %s1136_s18, %s1625_s2 }
 0x3a0   :  { %p1142_p7 = pnand %p1140_p6, %p1137_p5 }
 0x3a2   :  { %1145 = shalt.err (!%p1142_p7)
}
 0x3a3   :  { %887 = dma.vmem_to_hbm [thread:$0]  %s885_s11, 16, %s1625_s2, [#allocation4]  }
 0x3a4   :  { %1146 = dma.done.wait [#allocation4], 16  }
 0x3a5   :  { %1147 = vsyncadd [#allocation4], 4294967280 }
 0x3a6   :  { %891 = vsyncpa [#allocation4], 1 }

</bundles_post_ra>
